<compile_context>
chip_gen: v7x
topology: tpu7x:2x2x1
jax: 0.10.0
libtpu: 0.0.40
codegen_flags: <defaults>
</compile_context>

<pallas_src>
import numpy as np
import jax
import jax.numpy as jnp
from jax.experimental import pallas as pl
from jax.experimental.pallas import tpu as pltpu

EPS = 1e-6

# Flipped to False at runtime if this Pallas build rejects pipeline_mode=pl.Buffered(1)
# on pallas_call BlockSpecs (optimization is optional; correctness is identical).
_BUFFERED1_OK = True


# ----------------------------------------------------------------------------
# Pallas kernels
# ----------------------------------------------------------------------------
def make_layer_kernel(apply_final_norm: bool, n_heads: int):
    """One T5 encoder block. Grid = (B, n_ff_chunks).

    f == 0          : RMSNorm1 -> fused QKV (bf16) -> per-head attention, each
                      head's output stored into an (L, D) bf16 scratch -> ONE
                      (L,D)@(D,D) wo matmul -> residual -> RMSNorm2; stash
                      (residual f32, normed bf16) in VMEM scratch, zero FFN acc.
    every f         : acc += relu(xn2 @ wi[:, chunk]) @ wo_ff[chunk, :]
    f == last chunk : y = residual + acc  (optionally final RMSNorm), write out.
    """

    def kernel(x_ref, mb_ref, pb_ref,
               ln1_ref, wqkv_ref, wo_ref, ln2_ref, fln_ref,
               wi_ref, wof_ref,
               y_ref,
               resid_sc, xn2_sc, acc_sc, attn_sc):
        f = pl.program_id(1)
        n_f = pl.num_programs(1)

        @pl.when(f == 0)
        def _attention():
            x = x_ref[0].astype(jnp.float32)        # (L, D) f32 (input may be bf16)
            mb = mb_ref[0]                          # (1, L) bf16 additive key-mask bias
            L, D = x.shape
            H = n_heads
            dh = D // H

            # --- RMSNorm 1 (f32 stats), bf16 MXU input ---
            var = jnp.mean(x * x, axis=-1, keepdims=True)
            xn = (x * jax.lax.rsqrt(var + EPS) * ln1_ref[0]).astype(jnp.bfloat16)

            # --- fused QKV projection: one bf16 MXU pass, f32 accumulation,
            #     single bf16 cast of the (L, 3D) result ---
            qkv = jnp.dot(xn, wqkv_ref[...],
                          preferred_element_type=jnp.float32)        # (L, 3D) f32
            qkv_bf = qkv.astype(jnp.bfloat16)                        # (L, 3D) bf16

            # --- per-head attention; store each head's output straight into the
            #     (L, D) bf16 scratch (bounds live ranges), then ONE K=D matmul
            #     with wo instead of H underfilled K=dh matmuls ---
            for h in range(H):                                       # static unroll
                qh = qkv_bf[:, h * dh:(h + 1) * dh]
                kh = qkv_bf[:, D + h * dh:D + (h + 1) * dh]
                vh = qkv_bf[:, 2 * D + h * dh:2 * D + (h + 1) * dh]
                # T5: no 1/sqrt(d) scaling
                s = jnp.dot(qh, kh.T, preferred_element_type=jnp.float32)  # (L, L)
                s = s + pb_ref[h] + mb            # bf16 biases promote to f32
                s = s - jnp.max(s, axis=-1, keepdims=True)
                e = jnp.exp(s)
                p = (e * pl.reciprocal(jnp.sum(e, axis=-1, keepdims=True),
                                       approx=True)).astype(jnp.bfloat16)
                attn_sc[:, h * dh:(h + 1) * dh] = jnp.dot(
                    p, vh, preferred_element_type=jnp.float32).astype(jnp.bfloat16)

            # --- single full-depth output projection ---
            attn_proj = jnp.dot(attn_sc[...], wo_ref[...],
                                preferred_element_type=jnp.float32)   # (L, D) f32

            xr = x + attn_proj                                        # residual (f32)
            resid_sc[...] = xr

            # --- RMSNorm 2 (stash bf16 normed activations for the FFN chunks) ---
            var2 = jnp.mean(xr * xr, axis=-1, keepdims=True)
            xn2_sc[...] = (xr * jax.lax.rsqrt(var2 + EPS) * ln2_ref[0]
                           ).astype(jnp.bfloat16)
            acc_sc[...] = jnp.zeros_like(acc_sc)

        # --- FFN: stream one d_ff chunk per grid step, accumulate in f32 ---
        h_mid = jnp.maximum(
            jnp.dot(xn2_sc[...], wi_ref[...],
                    preferred_element_type=jnp.float32), 0.0).astype(jnp.bfloat16)
        acc_sc[...] += jnp.dot(h_mid, wof_ref[...],
                               preferred_element_type=jnp.float32)

        @pl.when(f == n_f - 1)
        def _finalize():
            y = resid_sc[...] + acc_sc[...]
            if apply_final_norm:             # fused final RMSNorm (last layer only)
                varf = jnp.mean(y * y, axis=-1, keepdims=True)
                y = y * jax.lax.rsqrt(varf + EPS) * fln_ref[0]
            y_ref[0] = y.astype(y_ref.dtype)

    return kernel


# ----------------------------------------------------------------------------
# pallas_call wrapper
# ----------------------------------------------------------------------------
def _pick_ff_chunk(F_, target):
    """Largest chunk <= target that divides F_ (prefer multiples of 128)."""
    if F_ <= target:
        return F_
    for c in range(target, 0, -128):
        if c > 0 and F_ % c == 0:
            return c
    return F_


def _vmem_budget_and_chunk_target():
    """Per-generation tuning: (vmem_limit_bytes, ff_chunk_target)."""
    try:
        vmem = pltpu.get_tpu_info().vmem_capacity_bytes
    except Exception:
        vmem = 64 * 1024 * 1024               # conservative (v7x-sized) fallback
    if vmem >= 100 * 1024 * 1024:             # v5e / v6e: 128 MiB physical VMEM
        return 96 * 1024 * 1024, 1024
    return 48 * 1024 * 1024, 512              # v7x: 64 MiB per TensorCore


def _encoder_layer(x, mask_bias, pos_bias, lw, final_ln, apply_final_norm,
                   out_dtype, vmem_limit):
    global _BUFFERED1_OK
    B, L, D = x.shape
    H = pos_bias.shape[0]
    F_ = lw['wi'].shape[1]
    fc = lw['ff_chunk']
    FC = F_ // fc

    kernel = make_layer_kernel(apply_final_norm, H)

    def build_specs(single_buffer_constants):
        ckw = {}
        if single_buffer_constants:
            # Grid-invariant blocks never change across the grid -> no need for
            # double-buffering; halves their VMEM footprint (matters on v7x).
            ckw = dict(pipeline_mode=pl.Buffered(1))
        return [
            pl.BlockSpec((1, L, D), lambda b, f: (b, 0, 0)),             # x (bf16)
            pl.BlockSpec((1, 1, L), lambda b, f: (b, 0, 0)),             # key-mask bias (bf16)
            pl.BlockSpec((H, L, L), lambda b, f: (0, 0, 0), **ckw),      # position bias (bf16, shared)
            pl.BlockSpec((1, D), lambda b, f: (0, 0), **ckw),            # ln1
            pl.BlockSpec((D, 3 * D), lambda b, f: (0, 0), **ckw),        # wqkv (bf16, fused)
            pl.BlockSpec((D, D), lambda b, f: (0, 0), **ckw),            # wo   (bf16)
            pl.BlockSpec((1, D), lambda b, f: (0, 0), **ckw),            # ln2
            pl.BlockSpec((1, D), lambda b, f: (0, 0), **ckw),            # final_ln
            pl.BlockSpec((D, fc), lambda b, f: (0, f)),                  # wi chunk (bf16, streamed)
            pl.BlockSpec((fc, D), lambda b, f: (f, 0)),                  # wo_ff chunk (bf16, streamed)
        ]

    def call(in_specs):
        return pl.pallas_call(
            kernel,
            out_shape=jax.ShapeDtypeStruct((B, L, D), out_dtype),
            grid=(B, FC),
            in_specs=in_specs,
            out_specs=pl.BlockSpec((1, L, D), lambda b, f: (b, 0, 0)),
            scratch_shapes=[
                pltpu.VMEM((L, D), jnp.float32),     # post-attention residual
                pltpu.VMEM((L, D), jnp.bfloat16),    # RMSNorm2 output (MXU input)
                pltpu.VMEM((L, D), jnp.float32),     # FFN accumulator
                pltpu.VMEM((L, D), jnp.bfloat16),    # per-head attention outputs
            ],
            compiler_params=pltpu.CompilerParams(
                dimension_semantics=("parallel", "arbitrary"),
                vmem_limit_bytes=vmem_limit),
        )(x, mask_bias, pos_bias, lw['ln1'], lw['wqkv'], lw['wo'],
          lw['ln2'], final_ln, lw['wi'], lw['wo_ff'])

    if _BUFFERED1_OK:
        try:
            return call(build_specs(True))
        except Exception:
            _BUFFERED1_OK = False            # optimization unsupported; fall back
    return call(build_specs(False))


# ----------------------------------------------------------------------------
# Glue: relative position bias (T5 bidirectional bucketing), params, wrapper
# ----------------------------------------------------------------------------
def compute_position_bias(rel_emb, L, num_buckets=32, max_distance=128,
                          dtype=jnp.bfloat16):
    ctx = jnp.arange(L)[:, None]
    mem = jnp.arange(L)[None, :]
    rel = mem - ctx                                          # (L, L)
    nb = num_buckets // 2
    buckets = (rel > 0).astype(jnp.int32) * nb
    rel_abs = jnp.abs(rel)
    max_exact = nb // 2
    is_small = rel_abs < max_exact
    rel_large = max_exact + (
        jnp.log(jnp.maximum(rel_abs, 1).astype(jnp.float32) / max_exact)
        / np.log(max_distance / max_exact) * (nb - max_exact)
    ).astype(jnp.int32)
    rel_large = jnp.minimum(rel_large, nb - 1)
    buckets = buckets + jnp.where(is_small, rel_abs, rel_large)
    bias = rel_emb[buckets]                                  # (L, L, H)
    return jnp.transpose(bias, (2, 0, 1)).astype(dtype)      # (H, L, L)


def init_params(key, vocab=64, d_model=32, n_heads=4, d_ff=64, n_layers=2,
                num_buckets=32):
    keys = jax.random.split(key, 2 + n_layers)
    params = {
        'emb': (jax.random.normal(keys[0], (vocab, d_model)) * 0.02).astype(jnp.float32),
        'rel_emb': (jax.random.normal(keys[1], (num_buckets, n_heads)) * 0.02).astype(jnp.float32),
        'final_ln': jnp.ones((1, d_model), jnp.float32),
        'layers': [],
    }
    for i in range(n_layers):
        lk = jax.random.split(keys[2 + i], 6)
        params['layers'].append({
            'ln1': jnp.ones((1, d_model), jnp.float32),
            'wq': (jax.random.normal(lk[0], (d_model, d_model)) * 0.05).astype(jnp.float32),
            'wk': (jax.random.normal(lk[1], (d_model, d_model)) * 0.05).astype(jnp.float32),
            'wv': (jax.random.normal(lk[2], (d_model, d_model)) * 0.05).astype(jnp.float32),
            'wo': (jax.random.normal(lk[3], (d_model, d_model)) * 0.05).astype(jnp.float32),
            'ln2': jnp.ones((1, d_model), jnp.float32),
            'wi': (jax.random.normal(lk[4], (d_model, d_ff)) * 0.05).astype(jnp.float32),
            'wo_ff': (jax.random.normal(lk[5], (d_ff, d_model)) * 0.05).astype(jnp.float32),
        })
    return params


class EncoderWrapperPallas:
    """JAX/Pallas equivalent of the PyTorch EncoderWrapper (FiD encoder)."""

    def __init__(self, params, n_passages, ff_chunk_target=None):
        self.n_passages = n_passages
        self.emb = params['emb']
        self.rel_emb = params['rel_emb']
        self.final_ln = params['final_ln']
        self.n_heads = params['rel_emb'].shape[1]
        self._vmem_limit, auto_target = _vmem_budget_and_chunk_target()
        target = ff_chunk_target if ff_chunk_target is not None else auto_target
        # Pre-pack weights once: fuse QKV column-wise and cast MXU operands to bf16.
        self.layers = []
        for lw in params['layers']:
            F_ = lw['wi'].shape[1]
            self.layers.append({
                'ln1': lw['ln1'].astype(jnp.float32),
                'ln2': lw['ln2'].astype(jnp.float32),
                'wqkv': jnp.concatenate([lw['wq'], lw['wk'], lw['wv']],
                                        axis=1).astype(jnp.bfloat16),
                'wo': lw['wo'].astype(jnp.bfloat16),
                'wi': lw['wi'].astype(jnp.bfloat16),
                'wo_ff': lw['wo_ff'].astype(jnp.bfloat16),
                'ff_chunk': _pick_ff_chunk(F_, target),
            })

    def __call__(self, input_ids, attention_mask):
        bsz, total_len = input_ids.shape
        passage_len = total_len // self.n_passages
        ids = input_ids.reshape(bsz * self.n_passages, passage_len)
        mask = attention_mask.reshape(bsz * self.n_passages, passage_len)

        # Inter-layer activations carried in bf16; in-kernel math stays f32.
        x = self.emb[ids].astype(jnp.bfloat16)                            # (B, L, D)
        # -1e9 still fully masks after the softmax max-subtract in bf16.
        mask_bias = ((1.0 - mask.astype(jnp.float32))[:, None, :]
                     * -1e9).astype(jnp.bfloat16)                         # (B, 1, L)
        pos_bias = compute_position_bias(self.rel_emb, passage_len)       # (H, L, L) bf16

        n_layers = len(self.layers)
        for i, lw in enumerate(self.layers):
            is_last = (i == n_layers - 1)
            x = _encoder_layer(x, mask_bias, pos_bias, lw, self.final_ln,
                               apply_final_norm=is_last,
                               out_dtype=jnp.float32 if is_last else jnp.bfloat16,
                               vmem_limit=self._vmem_limit)

        # FiD reshape: (bsz*n_passages, L, D) -> (bsz, n_passages*L, D)
        return x.reshape(bsz, self.n_passages * passage_len, -1)

    # TODO(synk): checkpointing (CheckpointWrapper) is a training-memory trick with
    # no forward-semantics impact; not replicated here.


# ----------------------------------------------------------------------------
# Pure-JAX f32 reference (for numerical check; kernel runs bf16 on the MXU and
# carries bf16 activations between layers, so the tolerance is relaxed).
# ----------------------------------------------------------------------------
def _ref_layer(x, mask_bias, pos_bias, lw):
    def rms(t, w):
        return t * jax.lax.rsqrt(jnp.mean(t * t, -1, keepdims=True) + EPS) * w
    B, L, D = x.shape
    H = pos_bias.shape[0]
    dh = D // H
    xn = rms(x, lw['ln1'][0])
    q = xn @ lw['wq']; k = xn @ lw['wk']; v = xn @ lw['wv']
    qh = q.reshape(B, L, H, dh).transpose(0, 2, 1, 3)
    kh = k.reshape(B, L, H, dh).transpose(0, 2, 1, 3)
    vh = v.reshape(B, L, H, dh).transpose(0, 2, 1, 3)
    s = jnp.einsum('bhld,bhmd->bhlm', qh, kh) + pos_bias[None] + mask_bias[:, None, :, :]
    p = jax.nn.softmax(s, -1)
    a = jnp.einsum('bhlm,bhmd->bhld', p, vh).transpose(0, 2, 1, 3).reshape(B, L, D)
    x = x + a @ lw['wo']
    xn2 = rms(x, lw['ln2'][0])
    x = x + jnp.maximum(xn2 @ lw['wi'], 0.0) @ lw['wo_ff']
    return x


def _ref_forward(params, input_ids, attention_mask, n_passages):
    bsz, total_len = input_ids.shape
    L = total_len // n_passages
    ids = input_ids.reshape(bsz * n_passages, L)
    mask = attention_mask.reshape(bsz * n_passages, L)
    x = params['emb'][ids]
    mask_bias = (1.0 - mask.astype(jnp.float32))[:, None, :] * -1e9
    pos_bias = compute_position_bias(params['rel_emb'], L, dtype=jnp.float32)
    for lw in params['layers']:
        x = _ref_layer(x, mask_bias, pos_bias, lw)
    x = x * jax.lax.rsqrt(jnp.mean(x * x, -1, keepdims=True) + EPS) * params['final_ln'][0]
    return x.reshape(bsz, n_passages * L, -1)


# ----------------------------------------------------------------------------
if __name__ == "__main__":
    key = jax.random.PRNGKey(0)
    k_params, k_ids = jax.random.split(key)

    vocab, d_model, n_heads, d_ff, n_layers = 64, 32, 4, 64, 2
    bsz, n_passages, passage_len = 2, 2, 8
    total_len = n_passages * passage_len

    params = init_params(k_params, vocab=vocab, d_model=d_model,
                         n_heads=n_heads, d_ff=d_ff, n_layers=n_layers)

    input_ids = jax.random.randint(k_ids, (bsz, total_len), 0, vocab, dtype=jnp.int32)
    # mask out the last token of each passage for realism
    pos_in_passage = jnp.arange(total_len) % passage_len
    attention_mask = jnp.broadcast_to((pos_in_passage < passage_len - 1).astype(jnp.int32),
                                      (bsz, total_len))

    model = EncoderWrapperPallas(params, n_passages)
    out = model(input_ids, attention_mask)
    out = jax.block_until_ready(out)

    assert out.shape == (bsz, n_passages * passage_len, d_model)
    assert out.dtype == jnp.float32

    # bf16 MXU inputs / inter-layer activations + approx reciprocal in softmax ->
    # compare to the f32 reference with a bf16-appropriate tolerance.
    ref = _ref_forward(params, input_ids, attention_mask, n_passages)
    np.testing.assert_allclose(np.asarray(out), np.asarray(ref), rtol=3e-2, atol=3e-2)

    print("KERNEL_OK")
</pallas_src>

<mosaic_0001>
module attributes {stable_mosaic.version = 11 : i64} {
  func.func @kernel(%arg0: i32, %arg1: i32, %arg2: memref<1x8x32xbf16, #tpu.memory_space<vmem>>, %arg3: memref<1x1x8xbf16, #tpu.memory_space<vmem>>, %arg4: memref<4x8x8xbf16, #tpu.memory_space<vmem>>, %arg5: memref<1x32xf32, #tpu.memory_space<vmem>>, %arg6: memref<32x96xbf16, #tpu.memory_space<vmem>>, %arg7: memref<32x32xbf16, #tpu.memory_space<vmem>>, %arg8: memref<1x32xf32, #tpu.memory_space<vmem>>, %arg9: memref<1x32xf32, #tpu.memory_space<vmem>>, %arg10: memref<32x64xbf16, #tpu.memory_space<vmem>>, %arg11: memref<64x32xbf16, #tpu.memory_space<vmem>>, %arg12: memref<1x8x32xbf16, #tpu.memory_space<vmem>>, %arg13: memref<8x32xf32, #tpu.memory_space<vmem>>, %arg14: memref<8x32xbf16, #tpu.memory_space<vmem>>, %arg15: memref<8x32xf32, #tpu.memory_space<vmem>>, %arg16: memref<8x32xbf16, #tpu.memory_space<vmem>>) attributes {dimension_semantics = [#tpu.dimension_semantics<parallel>, #tpu.dimension_semantics<arbitrary>], iteration_bounds = array<i64: 4, 1>, scalar_prefetch = 0 : i64, scratch_operands = 4 : i64, tpu.core_type = #tpu.core_type<tc>, window_params = [{transform_indices = @transform_0, window_bounds = array<i64: 1, 8, 32>}, {transform_indices = @transform_1, window_bounds = array<i64: 1, 1, 8>}, {pipeline_mode = #tpu.pipeline_mode<synchronous>, transform_indices = @transform_2, window_bounds = array<i64: 4, 8, 8>}, {pipeline_mode = #tpu.pipeline_mode<synchronous>, transform_indices = @transform_3, window_bounds = array<i64: 1, 32>}, {pipeline_mode = #tpu.pipeline_mode<synchronous>, transform_indices = @transform_4, window_bounds = array<i64: 32, 96>}, {pipeline_mode = #tpu.pipeline_mode<synchronous>, transform_indices = @transform_5, window_bounds = array<i64: 32, 32>}, {pipeline_mode = #tpu.pipeline_mode<synchronous>, transform_indices = @transform_6, window_bounds = array<i64: 1, 32>}, {pipeline_mode = #tpu.pipeline_mode<synchronous>, transform_indices = @transform_7, window_bounds = array<i64: 1, 32>}, {transform_indices = @transform_8, window_bounds = array<i64: 32, 64>}, {transform_indices = @transform_9, window_bounds = array<i64: 64, 32>}, {transform_indices = @transform_10, window_bounds = array<i64: 1, 8, 32>}]} {
    %c0_i32 = arith.constant 0 : i32
    %0 = arith.cmpi eq, %arg1, %c0_i32 : i32
    %1 = arith.extui %0 : i1 to i32
    %c0_i32_0 = arith.constant 0 : i32
    %2 = arith.cmpi ne, %1, %c0_i32_0 : i32
    scf.if %2 {
      %c0_14 = arith.constant 0 : index
      %c0_15 = arith.constant 0 : index
      %c0_16 = arith.constant 0 : index
      %17 = vector.load %arg2[%c0_14, %c0_15, %c0_16] : memref<1x8x32xbf16, #tpu.memory_space<vmem>>, vector<1x8x32xbf16>
      %18 = vector.shape_cast %17 : vector<1x8x32xbf16> to vector<8x32xbf16>
      %19 = arith.extf %18 : vector<8x32xbf16> to vector<8x32xf32>
      %c0_17 = arith.constant 0 : index
      %c0_18 = arith.constant 0 : index
      %c0_19 = arith.constant 0 : index
      %20 = vector.load %arg3[%c0_17, %c0_18, %c0_19] : memref<1x1x8xbf16, #tpu.memory_space<vmem>>, vector<1x1x8xbf16>
      %21 = vector.shape_cast %20 : vector<1x1x8xbf16> to vector<1x8xbf16>
      %22 = arith.mulf %19, %19 : vector<8x32xf32>
      %cst_20 = arith.constant dense<0.000000e+00> : vector<8xf32>
      %23 = vector.multi_reduction <add>, %22, %cst_20 [1] : vector<8x32xf32> to vector<8xf32>
      %24 = vector.shape_cast %23 : vector<8xf32> to vector<8x1xf32>
      %cst_21 = arith.constant 3.200000e+01 : f32
      %25 = vector.broadcast %cst_21 : f32 to vector<8x1xf32>
      %26 = arith.divf %24, %25 : vector<8x1xf32>
      %cst_22 = arith.constant 9.99999997E-7 : f32
      %27 = vector.broadcast %cst_22 : f32 to vector<8x1xf32>
      %28 = arith.addf %26, %27 : vector<8x1xf32>
      %29 = math.rsqrt %28 : vector<8x1xf32>
      %30 = vector.broadcast %29 : vector<8x1xf32> to vector<8x32xf32>
      %31 = arith.mulf %19, %30 : vector<8x32xf32>
      %c0_23 = arith.constant 0 : index
      %c0_24 = arith.constant 0 : index
      %32 = vector.load %arg5[%c0_23, %c0_24] : memref<1x32xf32, #tpu.memory_space<vmem>>, vector<1x32xf32>
      %33 = vector.shape_cast %32 : vector<1x32xf32> to vector<32xf32>
      %34 = vector.shape_cast %33 : vector<32xf32> to vector<1x32xf32>
      %35 = vector.broadcast %34 : vector<1x32xf32> to vector<8x32xf32>
      %36 = arith.mulf %31, %35 : vector<8x32xf32>
      %37 = arith.truncf %36 : vector<8x32xf32> to vector<8x32xbf16>
      %c0_25 = arith.constant 0 : index
      %c0_26 = arith.constant 0 : index
      %38 = vector.load %arg6[%c0_25, %c0_26] : memref<32x96xbf16, #tpu.memory_space<vmem>>, vector<32x96xbf16>
      %cst_27 = arith.constant dense<0.000000e+00> : vector<8x96xf32>
      %39 = tpu.matmul %37, %38, %cst_27 {dimension_numbers = #tpu.dot_dimension_numbers<[1], [0], [0], [1], [0, 0, 1, 1], [], []>} : vector<8x32xbf16>, vector<32x96xbf16>, vector<8x96xf32> -> vector<8x96xf32>
      %40 = arith.truncf %39 : vector<8x96xf32> to vector<8x96xbf16>
      %41 = vector.extract_strided_slice %40 {offsets = [0, 0], sizes = [8, 8], strides = [1, 1]} : vector<8x96xbf16> to vector<8x8xbf16>
      %42 = vector.extract_strided_slice %40 {offsets = [0, 32], sizes = [8, 8], strides = [1, 1]} : vector<8x96xbf16> to vector<8x8xbf16>
      %43 = vector.extract_strided_slice %40 {offsets = [0, 64], sizes = [8, 8], strides = [1, 1]} : vector<8x96xbf16> to vector<8x8xbf16>
      %44 = tpu.transpose %42, [1, 0] : vector<8x8xbf16> -> vector<8x8xbf16>
      %cst_28 = arith.constant dense<0.000000e+00> : vector<8x8xf32>
      %45 = tpu.matmul %41, %44, %cst_28 {dimension_numbers = #tpu.dot_dimension_numbers<[1], [0], [0], [1], [0, 0, 1, 1], [], []>} : vector<8x8xbf16>, vector<8x8xbf16>, vector<8x8xf32> -> vector<8x8xf32>
      %c0_29 = arith.constant 0 : index
      %c0_30 = arith.constant 0 : index
      %c0_31 = arith.constant 0 : index
      %46 = vector.load %arg4[%c0_29, %c0_30, %c0_31] : memref<4x8x8xbf16, #tpu.memory_space<vmem>>, vector<1x8x8xbf16>
      %47 = vector.shape_cast %46 : vector<1x8x8xbf16> to vector<8x8xbf16>
      %48 = arith.extf %47 : vector<8x8xbf16> to vector<8x8xf32>
      %49 = arith.addf %45, %48 : vector<8x8xf32>
      %50 = arith.extf %21 : vector<1x8xbf16> to vector<1x8xf32>
      %51 = vector.broadcast %50 : vector<1x8xf32> to vector<8x8xf32>
      %52 = arith.addf %49, %51 : vector<8x8xf32>
      %cst_32 = arith.constant dense<0xFF800000> : vector<8xf32>
      %53 = vector.multi_reduction <maximumf>, %52, %cst_32 [1] : vector<8x8xf32> to vector<8xf32>
      %54 = vector.shape_cast %53 : vector<8xf32> to vector<8x1xf32>
      %55 = vector.broadcast %54 : vector<8x1xf32> to vector<8x8xf32>
      %56 = arith.subf %52, %55 : vector<8x8xf32>
      %57 = math.exp %56 : vector<8x8xf32>
      %cst_33 = arith.constant dense<0.000000e+00> : vector<8xf32>
      %58 = vector.multi_reduction <add>, %57, %cst_33 [1] : vector<8x8xf32> to vector<8xf32>
      %59 = vector.shape_cast %58 : vector<8xf32> to vector<8x1xf32>
      %60 = tpu.reciprocal %59 {approx = true} : vector<8x1xf32> -> vector<8x1xf32>
      %61 = vector.broadcast %60 : vector<8x1xf32> to vector<8x8xf32>
      %62 = arith.mulf %57, %61 : vector<8x8xf32>
      %63 = arith.truncf %62 : vector<8x8xf32> to vector<8x8xbf16>
      %cst_34 = arith.constant dense<0.000000e+00> : vector<8x8xf32>
      %64 = tpu.matmul %63, %43, %cst_34 {dimension_numbers = #tpu.dot_dimension_numbers<[1], [0], [0], [1], [0, 0, 1, 1], [], []>} : vector<8x8xbf16>, vector<8x8xbf16>, vector<8x8xf32> -> vector<8x8xf32>
      %65 = arith.truncf %64 : vector<8x8xf32> to vector<8x8xbf16>
      %c0_35 = arith.constant 0 : index
      %c0_36 = arith.constant 0 : index
      %66 = vector.load %arg16[%c0_35, %c0_36] : memref<8x32xbf16, #tpu.memory_space<vmem>>, vector<8x8xbf16>
      tpu.vector_store %arg16[%c0_35, %c0_36], %65 {strides = array<i32>} : memref<8x32xbf16, #tpu.memory_space<vmem>>, vector<8x8xbf16>,
      %67 = vector.extract_strided_slice %40 {offsets = [0, 8], sizes = [8, 8], strides = [1, 1]} : vector<8x96xbf16> to vector<8x8xbf16>
      %68 = vector.extract_strided_slice %40 {offsets = [0, 40], sizes = [8, 8], strides = [1, 1]} : vector<8x96xbf16> to vector<8x8xbf16>
      %69 = vector.extract_strided_slice %40 {offsets = [0, 72], sizes = [8, 8], strides = [1, 1]} : vector<8x96xbf16> to vector<8x8xbf16>
      %70 = tpu.transpose %68, [1, 0] : vector<8x8xbf16> -> vector<8x8xbf16>
      %cst_37 = arith.constant dense<0.000000e+00> : vector<8x8xf32>
      %71 = tpu.matmul %67, %70, %cst_37 {dimension_numbers = #tpu.dot_dimension_numbers<[1], [0], [0], [1], [0, 0, 1, 1], [], []>} : vector<8x8xbf16>, vector<8x8xbf16>, vector<8x8xf32> -> vector<8x8xf32>
      %c1 = arith.constant 1 : index
      %c0_38 = arith.constant 0 : index
      %c0_39 = arith.constant 0 : index
      %72 = vector.load %arg4[%c1, %c0_38, %c0_39] : memref<4x8x8xbf16, #tpu.memory_space<vmem>>, vector<1x8x8xbf16>
      %73 = vector.shape_cast %72 : vector<1x8x8xbf16> to vector<8x8xbf16>
      %74 = arith.extf %73 : vector<8x8xbf16> to vector<8x8xf32>
      %75 = arith.addf %71, %74 : vector<8x8xf32>
      %76 = arith.extf %21 : vector<1x8xbf16> to vector<1x8xf32>
      %77 = vector.broadcast %76 : vector<1x8xf32> to vector<8x8xf32>
      %78 = arith.addf %75, %77 : vector<8x8xf32>
      %cst_40 = arith.constant dense<0xFF800000> : vector<8xf32>
      %79 = vector.multi_reduction <maximumf>, %78, %cst_40 [1] : vector<8x8xf32> to vector<8xf32>
      %80 = vector.shape_cast %79 : vector<8xf32> to vector<8x1xf32>
      %81 = vector.broadcast %80 : vector<8x1xf32> to vector<8x8xf32>
      %82 = arith.subf %78, %81 : vector<8x8xf32>
      %83 = math.exp %82 : vector<8x8xf32>
      %cst_41 = arith.constant dense<0.000000e+00> : vector<8xf32>
      %84 = vector.multi_reduction <add>, %83, %cst_41 [1] : vector<8x8xf32> to vector<8xf32>
      %85 = vector.shape_cast %84 : vector<8xf32> to vector<8x1xf32>
      %86 = tpu.reciprocal %85 {approx = true} : vector<8x1xf32> -> vector<8x1xf32>
      %87 = vector.broadcast %86 : vector<8x1xf32> to vector<8x8xf32>
      %88 = arith.mulf %83, %87 : vector<8x8xf32>
      %89 = arith.truncf %88 : vector<8x8xf32> to vector<8x8xbf16>
      %cst_42 = arith.constant dense<0.000000e+00> : vector<8x8xf32>
      %90 = tpu.matmul %89, %69, %cst_42 {dimension_numbers = #tpu.dot_dimension_numbers<[1], [0], [0], [1], [0, 0, 1, 1], [], []>} : vector<8x8xbf16>, vector<8x8xbf16>, vector<8x8xf32> -> vector<8x8xf32>
      %91 = arith.truncf %90 : vector<8x8xf32> to vector<8x8xbf16>
      %c0_43 = arith.constant 0 : index
      %c8 = arith.constant 8 : index
      %92 = vector.load %arg16[%c0_43, %c8] : memref<8x32xbf16, #tpu.memory_space<vmem>>, vector<8x8xbf16>
      tpu.vector_store %arg16[%c0_43, %c8], %91 {strides = array<i32>} : memref<8x32xbf16, #tpu.memory_space<vmem>>, vector<8x8xbf16>,
      %93 = vector.extract_strided_slice %40 {offsets = [0, 16], sizes = [8, 8], strides = [1, 1]} : vector<8x96xbf16> to vector<8x8xbf16>
      %94 = vector.extract_strided_slice %40 {offsets = [0, 48], sizes = [8, 8], strides = [1, 1]} : vector<8x96xbf16> to vector<8x8xbf16>
      %95 = vector.extract_strided_slice %40 {offsets = [0, 80], sizes = [8, 8], strides = [1, 1]} : vector<8x96xbf16> to vector<8x8xbf16>
      %96 = tpu.transpose %94, [1, 0] : vector<8x8xbf16> -> vector<8x8xbf16>
      %cst_44 = arith.constant dense<0.000000e+00> : vector<8x8xf32>
      %97 = tpu.matmul %93, %96, %cst_44 {dimension_numbers = #tpu.dot_dimension_numbers<[1], [0], [0], [1], [0, 0, 1, 1], [], []>} : vector<8x8xbf16>, vector<8x8xbf16>, vector<8x8xf32> -> vector<8x8xf32>
      %c2 = arith.constant 2 : index
      %c0_45 = arith.constant 0 : index
      %c0_46 = arith.constant 0 : index
      %98 = vector.load %arg4[%c2, %c0_45, %c0_46] : memref<4x8x8xbf16, #tpu.memory_space<vmem>>, vector<1x8x8xbf16>
      %99 = vector.shape_cast %98 : vector<1x8x8xbf16> to vector<8x8xbf16>
      %100 = arith.extf %99 : vector<8x8xbf16> to vector<8x8xf32>
      %101 = arith.addf %97, %100 : vector<8x8xf32>
      %102 = arith.extf %21 : vector<1x8xbf16> to vector<1x8xf32>
      %103 = vector.broadcast %102 : vector<1x8xf32> to vector<8x8xf32>
      %104 = arith.addf %101, %103 : vector<8x8xf32>
      %cst_47 = arith.constant dense<0xFF800000> : vector<8xf32>
      %105 = vector.multi_reduction <maximumf>, %104, %cst_47 [1] : vector<8x8xf32> to vector<8xf32>
      %106 = vector.shape_cast %105 : vector<8xf32> to vector<8x1xf32>
      %107 = vector.broadcast %106 : vector<8x1xf32> to vector<8x8xf32>
      %108 = arith.subf %104, %107 : vector<8x8xf32>
      %109 = math.exp %108 : vector<8x8xf32>
      %cst_48 = arith.constant dense<0.000000e+00> : vector<8xf32>
      %110 = vector.multi_reduction <add>, %109, %cst_48 [1] : vector<8x8xf32> to vector<8xf32>
      %111 = vector.shape_cast %110 : vector<8xf32> to vector<8x1xf32>
      %112 = tpu.reciprocal %111 {approx = true} : vector<8x1xf32> -> vector<8x1xf32>
      %113 = vector.broadcast %112 : vector<8x1xf32> to vector<8x8xf32>
      %114 = arith.mulf %109, %113 : vector<8x8xf32>
      %115 = arith.truncf %114 : vector<8x8xf32> to vector<8x8xbf16>
      %cst_49 = arith.constant dense<0.000000e+00> : vector<8x8xf32>
      %116 = tpu.matmul %115, %95, %cst_49 {dimension_numbers = #tpu.dot_dimension_numbers<[1], [0], [0], [1], [0, 0, 1, 1], [], []>} : vector<8x8xbf16>, vector<8x8xbf16>, vector<8x8xf32> -> vector<8x8xf32>
      %117 = arith.truncf %116 : vector<8x8xf32> to vector<8x8xbf16>
      %c0_50 = arith.constant 0 : index
      %c16 = arith.constant 16 : index
      %118 = vector.load %arg16[%c0_50, %c16] : memref<8x32xbf16, #tpu.memory_space<vmem>>, vector<8x8xbf16>
      tpu.vector_store %arg16[%c0_50, %c16], %117 {strides = array<i32>} : memref<8x32xbf16, #tpu.memory_space<vmem>>, vector<8x8xbf16>,
      %119 = vector.extract_strided_slice %40 {offsets = [0, 24], sizes = [8, 8], strides = [1, 1]} : vector<8x96xbf16> to vector<8x8xbf16>
      %120 = vector.extract_strided_slice %40 {offsets = [0, 56], sizes = [8, 8], strides = [1, 1]} : vector<8x96xbf16> to vector<8x8xbf16>
      %121 = vector.extract_strided_slice %40 {offsets = [0, 88], sizes = [8, 8], strides = [1, 1]} : vector<8x96xbf16> to vector<8x8xbf16>
      %122 = tpu.transpose %120, [1, 0] : vector<8x8xbf16> -> vector<8x8xbf16>
      %cst_51 = arith.constant dense<0.000000e+00> : vector<8x8xf32>
      %123 = tpu.matmul %119, %122, %cst_51 {dimension_numbers = #tpu.dot_dimension_numbers<[1], [0], [0], [1], [0, 0, 1, 1], [], []>} : vector<8x8xbf16>, vector<8x8xbf16>, vector<8x8xf32> -> vector<8x8xf32>
      %c3 = arith.constant 3 : index
      %c0_52 = arith.constant 0 : index
      %c0_53 = arith.constant 0 : index
      %124 = vector.load %arg4[%c3, %c0_52, %c0_53] : memref<4x8x8xbf16, #tpu.memory_space<vmem>>, vector<1x8x8xbf16>
      %125 = vector.shape_cast %124 : vector<1x8x8xbf16> to vector<8x8xbf16>
      %126 = arith.extf %125 : vector<8x8xbf16> to vector<8x8xf32>
      %127 = arith.addf %123, %126 : vector<8x8xf32>
      %128 = arith.extf %21 : vector<1x8xbf16> to vector<1x8xf32>
      %129 = vector.broadcast %128 : vector<1x8xf32> to vector<8x8xf32>
      %130 = arith.addf %127, %129 : vector<8x8xf32>
      %cst_54 = arith.constant dense<0xFF800000> : vector<8xf32>
      %131 = vector.multi_reduction <maximumf>, %130, %cst_54 [1] : vector<8x8xf32> to vector<8xf32>
      %132 = vector.shape_cast %131 : vector<8xf32> to vector<8x1xf32>
      %133 = vector.broadcast %132 : vector<8x1xf32> to vector<8x8xf32>
      %134 = arith.subf %130, %133 : vector<8x8xf32>
      %135 = math.exp %134 : vector<8x8xf32>
      %cst_55 = arith.constant dense<0.000000e+00> : vector<8xf32>
      %136 = vector.multi_reduction <add>, %135, %cst_55 [1] : vector<8x8xf32> to vector<8xf32>
      %137 = vector.shape_cast %136 : vector<8xf32> to vector<8x1xf32>
      %138 = tpu.reciprocal %137 {approx = true} : vector<8x1xf32> -> vector<8x1xf32>
      %139 = vector.broadcast %138 : vector<8x1xf32> to vector<8x8xf32>
      %140 = arith.mulf %135, %139 : vector<8x8xf32>
      %141 = arith.truncf %140 : vector<8x8xf32> to vector<8x8xbf16>
      %cst_56 = arith.constant dense<0.000000e+00> : vector<8x8xf32>
      %142 = tpu.matmul %141, %121, %cst_56 {dimension_numbers = #tpu.dot_dimension_numbers<[1], [0], [0], [1], [0, 0, 1, 1], [], []>} : vector<8x8xbf16>, vector<8x8xbf16>, vector<8x8xf32> -> vector<8x8xf32>
      %143 = arith.truncf %142 : vector<8x8xf32> to vector<8x8xbf16>
      %c0_57 = arith.constant 0 : index
      %c24 = arith.constant 24 : index
      %144 = vector.load %arg16[%c0_57, %c24] : memref<8x32xbf16, #tpu.memory_space<vmem>>, vector<8x8xbf16>
      tpu.vector_store %arg16[%c0_57, %c24], %143 {strides = array<i32>} : memref<8x32xbf16, #tpu.memory_space<vmem>>, vector<8x8xbf16>,
      %c0_58 = arith.constant 0 : index
      %c0_59 = arith.constant 0 : index
      %145 = vector.load %arg16[%c0_58, %c0_59] : memref<8x32xbf16, #tpu.memory_space<vmem>>, vector<8x32xbf16>
      %c0_60 = arith.constant 0 : index
      %c0_61 = arith.constant 0 : index
      %146 = vector.load %arg7[%c0_60, %c0_61] : memref<32x32xbf16, #tpu.memory_space<vmem>>, vector<32x32xbf16>
      %cst_62 = arith.constant dense<0.000000e+00> : vector<8x32xf32>
      %147 = tpu.matmul %145, %146, %cst_62 {dimension_numbers = #tpu.dot_dimension_numbers<[1], [0], [0], [1], [0, 0, 1, 1], [], []>} : vector<8x32xbf16>, vector<32x32xbf16>, vector<8x32xf32> -> vector<8x32xf32>
      %148 = arith.addf %19, %147 : vector<8x32xf32>
      %c0_63 = arith.constant 0 : index
      %c0_64 = arith.constant 0 : index
      %149 = vector.load %arg13[%c0_63, %c0_64] : memref<8x32xf32, #tpu.memory_space<vmem>>, vector<8x32xf32>
      tpu.vector_store %arg13[%c0_63, %c0_64], %148 {strides = array<i32>} : memref<8x32xf32, #tpu.memory_space<vmem>>, vector<8x32xf32>,
      %150 = arith.mulf %148, %148 : vector<8x32xf32>
      %cst_65 = arith.constant dense<0.000000e+00> : vector<8xf32>
      %151 = vector.multi_reduction <add>, %150, %cst_65 [1] : vector<8x32xf32> to vector<8xf32>
      %152 = vector.shape_cast %151 : vector<8xf32> to vector<8x1xf32>
      %cst_66 = arith.constant 3.200000e+01 : f32
      %153 = vector.broadcast %cst_66 : f32 to vector<8x1xf32>
      %154 = arith.divf %152, %153 : vector<8x1xf32>
      %cst_67 = arith.constant 9.99999997E-7 : f32
      %155 = vector.broadcast %cst_67 : f32 to vector<8x1xf32>
      %156 = arith.addf %154, %155 : vector<8x1xf32>
      %157 = math.rsqrt %156 : vector<8x1xf32>
      %158 = vector.broadcast %157 : vector<8x1xf32> to vector<8x32xf32>
      %159 = arith.mulf %148, %158 : vector<8x32xf32>
      %c0_68 = arith.constant 0 : index
      %c0_69 = arith.constant 0 : index
      %160 = vector.load %arg8[%c0_68, %c0_69] : memref<1x32xf32, #tpu.memory_space<vmem>>, vector<1x32xf32>
      %161 = vector.shape_cast %160 : vector<1x32xf32> to vector<32xf32>
      %162 = vector.shape_cast %161 : vector<32xf32> to vector<1x32xf32>
      %163 = vector.broadcast %162 : vector<1x32xf32> to vector<8x32xf32>
      %164 = arith.mulf %159, %163 : vector<8x32xf32>
      %165 = arith.truncf %164 : vector<8x32xf32> to vector<8x32xbf16>
      %c0_70 = arith.constant 0 : index
      %c0_71 = arith.constant 0 : index
      %166 = vector.load %arg14[%c0_70, %c0_71] : memref<8x32xbf16, #tpu.memory_space<vmem>>, vector<8x32xbf16>
      tpu.vector_store %arg14[%c0_70, %c0_71], %165 {strides = array<i32>} : memref<8x32xbf16, #tpu.memory_space<vmem>>, vector<8x32xbf16>,
      %cst_72 = arith.constant 0.000000e+00 : f32
      %167 = vector.broadcast %cst_72 : f32 to vector<8x32xf32>
      %c0_73 = arith.constant 0 : index
      %c0_74 = arith.constant 0 : index
      %168 = vector.load %arg15[%c0_73, %c0_74] : memref<8x32xf32, #tpu.memory_space<vmem>>, vector<8x32xf32>
      tpu.vector_store %arg15[%c0_73, %c0_74], %167 {strides = array<i32>} : memref<8x32xf32, #tpu.memory_space<vmem>>, vector<8x32xf32>,
    } else {
    }
    %c0 = arith.constant 0 : index
    %c0_1 = arith.constant 0 : index
    %3 = vector.load %arg14[%c0, %c0_1] : memref<8x32xbf16, #tpu.memory_space<vmem>>, vector<8x32xbf16>
    %c0_2 = arith.constant 0 : index
    %c0_3 = arith.constant 0 : index
    %4 = vector.load %arg10[%c0_2, %c0_3] : memref<32x64xbf16, #tpu.memory_space<vmem>>, vector<32x64xbf16>
    %cst = arith.constant dense<0.000000e+00> : vector<8x64xf32>
    %5 = tpu.matmul %3, %4, %cst {dimension_numbers = #tpu.dot_dimension_numbers<[1], [0], [0], [1], [0, 0, 1, 1], [], []>} : vector<8x32xbf16>, vector<32x64xbf16>, vector<8x64xf32> -> vector<8x64xf32>
    %cst_4 = arith.constant 0.000000e+00 : f32
    %6 = vector.broadcast %cst_4 : f32 to vector<8x64xf32>
    %7 = arith.maximumf %5, %6 : vector<8x64xf32>
    %8 = arith.truncf %7 : vector<8x64xf32> to vector<8x64xbf16>
    %c0_5 = arith.constant 0 : index
    %c0_6 = arith.constant 0 : index
    %9 = vector.load %arg15[%c0_5, %c0_6] : memref<8x32xf32, #tpu.memory_space<vmem>>, vector<8x32xf32>
    %c0_7 = arith.constant 0 : index
    %c0_8 = arith.constant 0 : index
    %10 = vector.load %arg11[%c0_7, %c0_8] : memref<64x32xbf16, #tpu.memory_space<vmem>>, vector<64x32xbf16>
    %cst_9 = arith.constant dense<0.000000e+00> : vector<8x32xf32>
    %11 = tpu.matmul %8, %10, %cst_9 {dimension_numbers = #tpu.dot_dimension_numbers<[1], [0], [0], [1], [0, 0, 1, 1], [], []>} : vector<8x64xbf16>, vector<64x32xbf16>, vector<8x32xf32> -> vector<8x32xf32>
    %12 = arith.addf %9, %11 : vector<8x32xf32>
    %c0_10 = arith.constant 0 : index
    %c0_11 = arith.constant 0 : index
    %13 = vector.load %arg15[%c0_10, %c0_11] : memref<8x32xf32, #tpu.memory_space<vmem>>, vector<8x32xf32>
    tpu.vector_store %arg15[%c0_10, %c0_11], %12 {strides = array<i32>} : memref<8x32xf32, #tpu.memory_space<vmem>>, vector<8x32xf32>,
    %c0_i32_12 = arith.constant 0 : i32
    %14 = arith.cmpi eq, %arg1, %c0_i32_12 : i32
    %15 = arith.extui %14 : i1 to i32
    %c0_i32_13 = arith.constant 0 : i32
    %16 = arith.cmpi ne, %15, %c0_i32_13 : i32
    scf.if %16 {
      %c0_14 = arith.constant 0 : index
      %c0_15 = arith.constant 0 : index
      %17 = vector.load %arg13[%c0_14, %c0_15] : memref<8x32xf32, #tpu.memory_space<vmem>>, vector<8x32xf32>
      %c0_16 = arith.constant 0 : index
      %c0_17 = arith.constant 0 : index
      %18 = vector.load %arg15[%c0_16, %c0_17] : memref<8x32xf32, #tpu.memory_space<vmem>>, vector<8x32xf32>
      %19 = arith.addf %17, %18 : vector<8x32xf32>
      %20 = arith.truncf %19 : vector<8x32xf32> to vector<8x32xbf16>
      %c0_18 = arith.constant 0 : index
      %c0_19 = arith.constant 0 : index
      %c0_20 = arith.constant 0 : index
      %21 = vector.load %arg12[%c0_18, %c0_19, %c0_20] : memref<1x8x32xbf16, #tpu.memory_space<vmem>>, vector<1x8x32xbf16>
      %22 = vector.shape_cast %21 : vector<1x8x32xbf16> to vector<8x32xbf16>
      %23 = vector.shape_cast %20 : vector<8x32xbf16> to vector<1x8x32xbf16>
      tpu.vector_store %arg12[%c0_18, %c0_19, %c0_20], %23 {strides = array<i32>} : memref<1x8x32xbf16, #tpu.memory_space<vmem>>, vector<1x8x32xbf16>,
    } else {
    }
    return
  }
  func.func @transform_0(%arg0: i32, %arg1: i32) -> (i32, i32, i32) {
    %c0_i32 = arith.constant 0 : i32
    %c0_i32_0 = arith.constant 0 : i32
    %c0_i32_1 = arith.constant 0 : i32
    return %arg0, %c0_i32, %c0_i32_0 : i32, i32, i32
  }
  func.func @transform_1(%arg0: i32, %arg1: i32) -> (i32, i32, i32) {
    %c0_i32 = arith.constant 0 : i32
    %c0_i32_0 = arith.constant 0 : i32
    %c0_i32_1 = arith.constant 0 : i32
    return %arg0, %c0_i32, %c0_i32_0 : i32, i32, i32
  }
  func.func @transform_2(%arg0: i32, %arg1: i32) -> (i32, i32, i32) {
    %c0_i32 = arith.constant 0 : i32
    %c0_i32_0 = arith.constant 0 : i32
    %c0_i32_1 = arith.constant 0 : i32
    %c0_i32_2 = arith.constant 0 : i32
    return %c0_i32, %c0_i32_0, %c0_i32_1 : i32, i32, i32
  }
  func.func @transform_3(%arg0: i32, %arg1: i32) -> (i32, i32) {
    %c0_i32 = arith.constant 0 : i32
    %c0_i32_0 = arith.constant 0 : i32
    %c0_i32_1 = arith.constant 0 : i32
    return %c0_i32, %c0_i32_0 : i32, i32
  }
  func.func @transform_4(%arg0: i32, %arg1: i32) -> (i32, i32) {
    %c0_i32 = arith.constant 0 : i32
    %c0_i32_0 = arith.constant 0 : i32
    %c0_i32_1 = arith.constant 0 : i32
    return %c0_i32, %c0_i32_0 : i32, i32
  }
  func.func @transform_5(%arg0: i32, %arg1: i32) -> (i32, i32) {
    %c0_i32 = arith.constant 0 : i32
    %c0_i32_0 = arith.constant 0 : i32
    %c0_i32_1 = arith.constant 0 : i32
    return %c0_i32, %c0_i32_0 : i32, i32
  }
  func.func @transform_6(%arg0: i32, %arg1: i32) -> (i32, i32) {
    %c0_i32 = arith.constant 0 : i32
    %c0_i32_0 = arith.constant 0 : i32
    %c0_i32_1 = arith.constant 0 : i32
    return %c0_i32, %c0_i32_0 : i32, i32
  }
  func.func @transform_7(%arg0: i32, %arg1: i32) -> (i32, i32) {
    %c0_i32 = arith.constant 0 : i32
    %c0_i32_0 = arith.constant 0 : i32
    %c0_i32_1 = arith.constant 0 : i32
    return %c0_i32, %c0_i32_0 : i32, i32
  }
  func.func @transform_8(%arg0: i32, %arg1: i32) -> (i32, i32) {
    %c0_i32 = arith.constant 0 : i32
    %c0_i32_0 = arith.constant 0 : i32
    return %c0_i32, %arg1 : i32, i32
  }
  func.func @transform_9(%arg0: i32, %arg1: i32) -> (i32, i32) {
    %c0_i32 = arith.constant 0 : i32
    %c0_i32_0 = arith.constant 0 : i32
    return %arg1, %c0_i32 : i32, i32
  }
  func.func @transform_10(%arg0: i32, %arg1: i32) -> (i32, i32, i32) {
    %c0_i32 = arith.constant 0 : i32
    %c0_i32_0 = arith.constant 0 : i32
    %c0_i32_1 = arith.constant 0 : i32
    return %arg0, %c0_i32, %c0_i32_0 : i32, i32, i32
  }
}

module attributes {stable_mosaic.version = 11 : i64} {
  func.func @kernel(%arg0: i32, %arg1: i32, %arg2: memref<1x8x32xbf16, #tpu.memory_space<vmem>>, %arg3: memref<1x1x8xbf16, #tpu.memory_space<vmem>>, %arg4: memref<4x8x8xbf16, #tpu.memory_space<vmem>>, %arg5: memref<1x32xf32, #tpu.memory_space<vmem>>, %arg6: memref<32x96xbf16, #tpu.memory_space<vmem>>, %arg7: memref<32x32xbf16, #tpu.memory_space<vmem>>, %arg8: memref<1x32xf32, #tpu.memory_space<vmem>>, %arg9: memref<1x32xf32, #tpu.memory_space<vmem>>, %arg10: memref<32x64xbf16, #tpu.memory_space<vmem>>, %arg11: memref<64x32xbf16, #tpu.memory_space<vmem>>, %arg12: memref<1x8x32xbf16, #tpu.memory_space<vmem>>, %arg13: memref<8x32xf32, #tpu.memory_space<vmem>>, %arg14: memref<8x32xbf16, #tpu.memory_space<vmem>>, %arg15: memref<8x32xf32, #tpu.memory_space<vmem>>, %arg16: memref<8x32xbf16, #tpu.memory_space<vmem>>) attributes {dimension_semantics = [#tpu.dimension_semantics<parallel>, #tpu.dimension_semantics<arbitrary>], iteration_bounds = array<i64: 4, 1>, scalar_prefetch = 0 : i64, scratch_operands = 4 : i64, tpu.core_type = #tpu.core_type<tc>, window_params = [{transform_indices = @transform_0, window_bounds = array<i64: 1, 8, 32>}, {transform_indices = @transform_1, window_bounds = array<i64: 1, 1, 8>}, {pipeline_mode = #tpu.pipeline_mode<synchronous>, transform_indices = @transform_2, window_bounds = array<i64: 4, 8, 8>}, {pipeline_mode = #tpu.pipeline_mode<synchronous>, transform_indices = @transform_3, window_bounds = array<i64: 1, 32>}, {pipeline_mode = #tpu.pipeline_mode<synchronous>, transform_indices = @transform_4, window_bounds = array<i64: 32, 96>}, {pipeline_mode = #tpu.pipeline_mode<synchronous>, transform_indices = @transform_5, window_bounds = array<i64: 32, 32>}, {pipeline_mode = #tpu.pipeline_mode<synchronous>, transform_indices = @transform_6, window_bounds = array<i64: 1, 32>}, {pipeline_mode = #tpu.pipeline_mode<synchronous>, transform_indices = @transform_7, window_bounds = array<i64: 1, 32>}, {transform_indices = @transform_8, window_bounds = array<i64: 32, 64>}, {transform_indices = @transform_9, window_bounds = array<i64: 64, 32>}, {transform_indices = @transform_10, window_bounds = array<i64: 1, 8, 32>}]} {
    %c0_i32 = arith.constant 0 : i32
    %0 = arith.cmpi eq, %arg1, %c0_i32 : i32
    %1 = arith.extui %0 : i1 to i32
    %c0_i32_0 = arith.constant 0 : i32
    %2 = arith.cmpi ne, %1, %c0_i32_0 : i32
    scf.if %2 {
      %c0_14 = arith.constant 0 : index
      %c0_15 = arith.constant 0 : index
      %c0_16 = arith.constant 0 : index
      %17 = vector.load %arg2[%c0_14, %c0_15, %c0_16] : memref<1x8x32xbf16, #tpu.memory_space<vmem>>, vector<1x8x32xbf16>
      %18 = vector.shape_cast %17 : vector<1x8x32xbf16> to vector<8x32xbf16>
      %19 = arith.extf %18 : vector<8x32xbf16> to vector<8x32xf32>
      %c0_17 = arith.constant 0 : index
      %c0_18 = arith.constant 0 : index
      %c0_19 = arith.constant 0 : index
      %20 = vector.load %arg3[%c0_17, %c0_18, %c0_19] : memref<1x1x8xbf16, #tpu.memory_space<vmem>>, vector<1x1x8xbf16>
      %21 = vector.shape_cast %20 : vector<1x1x8xbf16> to vector<1x8xbf16>
      %22 = arith.mulf %19, %19 : vector<8x32xf32>
      %cst_20 = arith.constant dense<0.000000e+00> : vector<8xf32>
      %23 = vector.multi_reduction <add>, %22, %cst_20 [1] : vector<8x32xf32> to vector<8xf32>
      %24 = vector.shape_cast %23 : vector<8xf32> to vector<8x1xf32>
      %cst_21 = arith.constant 3.200000e+01 : f32
      %25 = vector.broadcast %cst_21 : f32 to vector<8x1xf32>
      %26 = arith.divf %24, %25 : vector<8x1xf32>
      %cst_22 = arith.constant 9.99999997E-7 : f32
      %27 = vector.broadcast %cst_22 : f32 to vector<8x1xf32>
      %28 = arith.addf %26, %27 : vector<8x1xf32>
      %29 = math.rsqrt %28 : vector<8x1xf32>
      %30 = vector.broadcast %29 : vector<8x1xf32> to vector<8x32xf32>
      %31 = arith.mulf %19, %30 : vector<8x32xf32>
      %c0_23 = arith.constant 0 : index
      %c0_24 = arith.constant 0 : index
      %32 = vector.load %arg5[%c0_23, %c0_24] : memref<1x32xf32, #tpu.memory_space<vmem>>, vector<1x32xf32>
      %33 = vector.shape_cast %32 : vector<1x32xf32> to vector<32xf32>
      %34 = vector.shape_cast %33 : vector<32xf32> to vector<1x32xf32>
      %35 = vector.broadcast %34 : vector<1x32xf32> to vector<8x32xf32>
      %36 = arith.mulf %31, %35 : vector<8x32xf32>
      %37 = arith.truncf %36 : vector<8x32xf32> to vector<8x32xbf16>
      %c0_25 = arith.constant 0 : index
      %c0_26 = arith.constant 0 : index
      %38 = vector.load %arg6[%c0_25, %c0_26] : memref<32x96xbf16, #tpu.memory_space<vmem>>, vector<32x96xbf16>
      %cst_27 = arith.constant dense<0.000000e+00> : vector<8x96xf32>
      %39 = tpu.matmul %37, %38, %cst_27 {dimension_numbers = #tpu.dot_dimension_numbers<[1], [0], [0], [1], [0, 0, 1, 1], [], []>} : vector<8x32xbf16>, vector<32x96xbf16>, vector<8x96xf32> -> vector<8x96xf32>
      %40 = arith.truncf %39 : vector<8x96xf32> to vector<8x96xbf16>
      %41 = vector.extract_strided_slice %40 {offsets = [0, 0], sizes = [8, 8], strides = [1, 1]} : vector<8x96xbf16> to vector<8x8xbf16>
      %42 = vector.extract_strided_slice %40 {offsets = [0, 32], sizes = [8, 8], strides = [1, 1]} : vector<8x96xbf16> to vector<8x8xbf16>
      %43 = vector.extract_strided_slice %40 {offsets = [0, 64], sizes = [8, 8], strides = [1, 1]} : vector<8x96xbf16> to vector<8x8xbf16>
      %44 = tpu.transpose %42, [1, 0] : vector<8x8xbf16> -> vector<8x8xbf16>
      %cst_28 = arith.constant dense<0.000000e+00> : vector<8x8xf32>
      %45 = tpu.matmul %41, %44, %cst_28 {dimension_numbers = #tpu.dot_dimension_numbers<[1], [0], [0], [1], [0, 0, 1, 1], [], []>} : vector<8x8xbf16>, vector<8x8xbf16>, vector<8x8xf32> -> vector<8x8xf32>
      %c0_29 = arith.constant 0 : index
      %c0_30 = arith.constant 0 : index
      %c0_31 = arith.constant 0 : index
      %46 = vector.load %arg4[%c0_29, %c0_30, %c0_31] : memref<4x8x8xbf16, #tpu.memory_space<vmem>>, vector<1x8x8xbf16>
      %47 = vector.shape_cast %46 : vector<1x8x8xbf16> to vector<8x8xbf16>
      %48 = arith.extf %47 : vector<8x8xbf16> to vector<8x8xf32>
      %49 = arith.addf %45, %48 : vector<8x8xf32>
      %50 = arith.extf %21 : vector<1x8xbf16> to vector<1x8xf32>
      %51 = vector.broadcast %50 : vector<1x8xf32> to vector<8x8xf32>
      %52 = arith.addf %49, %51 : vector<8x8xf32>
      %cst_32 = arith.constant dense<0xFF800000> : vector<8xf32>
      %53 = vector.multi_reduction <maximumf>, %52, %cst_32 [1] : vector<8x8xf32> to vector<8xf32>
      %54 = vector.shape_cast %53 : vector<8xf32> to vector<8x1xf32>
      %55 = vector.broadcast %54 : vector<8x1xf32> to vector<8x8xf32>
      %56 = arith.subf %52, %55 : vector<8x8xf32>
      %57 = math.exp %56 : vector<8x8xf32>
      %cst_33 = arith.constant dense<0.000000e+00> : vector<8xf32>
      %58 = vector.multi_reduction <add>, %57, %cst_33 [1] : vector<8x8xf32> to vector<8xf32>
      %59 = vector.shape_cast %58 : vector<8xf32> to vector<8x1xf32>
      %60 = tpu.reciprocal %59 {approx = true} : vector<8x1xf32> -> vector<8x1xf32>
      %61 = vector.broadcast %60 : vector<8x1xf32> to vector<8x8xf32>
      %62 = arith.mulf %57, %61 : vector<8x8xf32>
      %63 = arith.truncf %62 : vector<8x8xf32> to vector<8x8xbf16>
      %cst_34 = arith.constant dense<0.000000e+00> : vector<8x8xf32>
      %64 = tpu.matmul %63, %43, %cst_34 {dimension_numbers = #tpu.dot_dimension_numbers<[1], [0], [0], [1], [0, 0, 1, 1], [], []>} : vector<8x8xbf16>, vector<8x8xbf16>, vector<8x8xf32> -> vector<8x8xf32>
      %65 = arith.truncf %64 : vector<8x8xf32> to vector<8x8xbf16>
      %c0_35 = arith.constant 0 : index
      %c0_36 = arith.constant 0 : index
      %66 = vector.load %arg16[%c0_35, %c0_36] : memref<8x32xbf16, #tpu.memory_space<vmem>>, vector<8x8xbf16>
      tpu.vector_store %arg16[%c0_35, %c0_36], %65 {strides = array<i32>} : memref<8x32xbf16, #tpu.memory_space<vmem>>, vector<8x8xbf16>,
      %67 = vector.extract_strided_slice %40 {offsets = [0, 8], sizes = [8, 8], strides = [1, 1]} : vector<8x96xbf16> to vector<8x8xbf16>
      %68 = vector.extract_strided_slice %40 {offsets = [0, 40], sizes = [8, 8], strides = [1, 1]} : vector<8x96xbf16> to vector<8x8xbf16>
      %69 = vector.extract_strided_slice %40 {offsets = [0, 72], sizes = [8, 8], strides = [1, 1]} : vector<8x96xbf16> to vector<8x8xbf16>
      %70 = tpu.transpose %68, [1, 0] : vector<8x8xbf16> -> vector<8x8xbf16>
      %cst_37 = arith.constant dense<0.000000e+00> : vector<8x8xf32>
      %71 = tpu.matmul %67, %70, %cst_37 {dimension_numbers = #tpu.dot_dimension_numbers<[1], [0], [0], [1], [0, 0, 1, 1], [], []>} : vector<8x8xbf16>, vector<8x8xbf16>, vector<8x8xf32> -> vector<8x8xf32>
      %c1 = arith.constant 1 : index
      %c0_38 = arith.constant 0 : index
      %c0_39 = arith.constant 0 : index
      %72 = vector.load %arg4[%c1, %c0_38, %c0_39] : memref<4x8x8xbf16, #tpu.memory_space<vmem>>, vector<1x8x8xbf16>
      %73 = vector.shape_cast %72 : vector<1x8x8xbf16> to vector<8x8xbf16>
      %74 = arith.extf %73 : vector<8x8xbf16> to vector<8x8xf32>
      %75 = arith.addf %71, %74 : vector<8x8xf32>
      %76 = arith.extf %21 : vector<1x8xbf16> to vector<1x8xf32>
      %77 = vector.broadcast %76 : vector<1x8xf32> to vector<8x8xf32>
      %78 = arith.addf %75, %77 : vector<8x8xf32>
      %cst_40 = arith.constant dense<0xFF800000> : vector<8xf32>
      %79 = vector.multi_reduction <maximumf>, %78, %cst_40 [1] : vector<8x8xf32> to vector<8xf32>
      %80 = vector.shape_cast %79 : vector<8xf32> to vector<8x1xf32>
      %81 = vector.broadcast %80 : vector<8x1xf32> to vector<8x8xf32>
      %82 = arith.subf %78, %81 : vector<8x8xf32>
      %83 = math.exp %82 : vector<8x8xf32>
      %cst_41 = arith.constant dense<0.000000e+00> : vector<8xf32>
      %84 = vector.multi_reduction <add>, %83, %cst_41 [1] : vector<8x8xf32> to vector<8xf32>
      %85 = vector.shape_cast %84 : vector<8xf32> to vector<8x1xf32>
      %86 = tpu.reciprocal %85 {approx = true} : vector<8x1xf32> -> vector<8x1xf32>
      %87 = vector.broadcast %86 : vector<8x1xf32> to vector<8x8xf32>
      %88 = arith.mulf %83, %87 : vector<8x8xf32>
      %89 = arith.truncf %88 : vector<8x8xf32> to vector<8x8xbf16>
      %cst_42 = arith.constant dense<0.000000e+00> : vector<8x8xf32>
      %90 = tpu.matmul %89, %69, %cst_42 {dimension_numbers = #tpu.dot_dimension_numbers<[1], [0], [0], [1], [0, 0, 1, 1], [], []>} : vector<8x8xbf16>, vector<8x8xbf16>, vector<8x8xf32> -> vector<8x8xf32>
      %91 = arith.truncf %90 : vector<8x8xf32> to vector<8x8xbf16>
      %c0_43 = arith.constant 0 : index
      %c8 = arith.constant 8 : index
      %92 = vector.load %arg16[%c0_43, %c8] : memref<8x32xbf16, #tpu.memory_space<vmem>>, vector<8x8xbf16>
      tpu.vector_store %arg16[%c0_43, %c8], %91 {strides = array<i32>} : memref<8x32xbf16, #tpu.memory_space<vmem>>, vector<8x8xbf16>,
      %93 = vector.extract_strided_slice %40 {offsets = [0, 16], sizes = [8, 8], strides = [1, 1]} : vector<8x96xbf16> to vector<8x8xbf16>
      %94 = vector.extract_strided_slice %40 {offsets = [0, 48], sizes = [8, 8], strides = [1, 1]} : vector<8x96xbf16> to vector<8x8xbf16>
      %95 = vector.extract_strided_slice %40 {offsets = [0, 80], sizes = [8, 8], strides = [1, 1]} : vector<8x96xbf16> to vector<8x8xbf16>
      %96 = tpu.transpose %94, [1, 0] : vector<8x8xbf16> -> vector<8x8xbf16>
      %cst_44 = arith.constant dense<0.000000e+00> : vector<8x8xf32>
      %97 = tpu.matmul %93, %96, %cst_44 {dimension_numbers = #tpu.dot_dimension_numbers<[1], [0], [0], [1], [0, 0, 1, 1], [], []>} : vector<8x8xbf16>, vector<8x8xbf16>, vector<8x8xf32> -> vector<8x8xf32>
      %c2 = arith.constant 2 : index
      %c0_45 = arith.constant 0 : index
      %c0_46 = arith.constant 0 : index
      %98 = vector.load %arg4[%c2, %c0_45, %c0_46] : memref<4x8x8xbf16, #tpu.memory_space<vmem>>, vector<1x8x8xbf16>
      %99 = vector.shape_cast %98 : vector<1x8x8xbf16> to vector<8x8xbf16>
      %100 = arith.extf %99 : vector<8x8xbf16> to vector<8x8xf32>
      %101 = arith.addf %97, %100 : vector<8x8xf32>
      %102 = arith.extf %21 : vector<1x8xbf16> to vector<1x8xf32>
      %103 = vector.broadcast %102 : vector<1x8xf32> to vector<8x8xf32>
      %104 = arith.addf %101, %103 : vector<8x8xf32>
      %cst_47 = arith.constant dense<0xFF800000> : vector<8xf32>
      %105 = vector.multi_reduction <maximumf>, %104, %cst_47 [1] : vector<8x8xf32> to vector<8xf32>
      %106 = vector.shape_cast %105 : vector<8xf32> to vector<8x1xf32>
      %107 = vector.broadcast %106 : vector<8x1xf32> to vector<8x8xf32>
      %108 = arith.subf %104, %107 : vector<8x8xf32>
      %109 = math.exp %108 : vector<8x8xf32>
      %cst_48 = arith.constant dense<0.000000e+00> : vector<8xf32>
      %110 = vector.multi_reduction <add>, %109, %cst_48 [1] : vector<8x8xf32> to vector<8xf32>
      %111 = vector.shape_cast %110 : vector<8xf32> to vector<8x1xf32>
      %112 = tpu.reciprocal %111 {approx = true} : vector<8x1xf32> -> vector<8x1xf32>
      %113 = vector.broadcast %112 : vector<8x1xf32> to vector<8x8xf32>
      %114 = arith.mulf %109, %113 : vector<8x8xf32>
      %115 = arith.truncf %114 : vector<8x8xf32> to vector<8x8xbf16>
      %cst_49 = arith.constant dense<0.000000e+00> : vector<8x8xf32>
      %116 = tpu.matmul %115, %95, %cst_49 {dimension_numbers = #tpu.dot_dimension_numbers<[1], [0], [0], [1], [0, 0, 1, 1], [], []>} : vector<8x8xbf16>, vector<8x8xbf16>, vector<8x8xf32> -> vector<8x8xf32>
      %117 = arith.truncf %116 : vector<8x8xf32> to vector<8x8xbf16>
      %c0_50 = arith.constant 0 : index
      %c16 = arith.constant 16 : index
      %118 = vector.load %arg16[%c0_50, %c16] : memref<8x32xbf16, #tpu.memory_space<vmem>>, vector<8x8xbf16>
      tpu.vector_store %arg16[%c0_50, %c16], %117 {strides = array<i32>} : memref<8x32xbf16, #tpu.memory_space<vmem>>, vector<8x8xbf16>,
      %119 = vector.extract_strided_slice %40 {offsets = [0, 24], sizes = [8, 8], strides = [1, 1]} : vector<8x96xbf16> to vector<8x8xbf16>
      %120 = vector.extract_strided_slice %40 {offsets = [0, 56], sizes = [8, 8], strides = [1, 1]} : vector<8x96xbf16> to vector<8x8xbf16>
      %121 = vector.extract_strided_slice %40 {offsets = [0, 88], sizes = [8, 8], strides = [1, 1]} : vector<8x96xbf16> to vector<8x8xbf16>
      %122 = tpu.transpose %120, [1, 0] : vector<8x8xbf16> -> vector<8x8xbf16>
      %cst_51 = arith.constant dense<0.000000e+00> : vector<8x8xf32>
      %123 = tpu.matmul %119, %122, %cst_51 {dimension_numbers = #tpu.dot_dimension_numbers<[1], [0], [0], [1], [0, 0, 1, 1], [], []>} : vector<8x8xbf16>, vector<8x8xbf16>, vector<8x8xf32> -> vector<8x8xf32>
      %c3 = arith.constant 3 : index
      %c0_52 = arith.constant 0 : index
      %c0_53 = arith.constant 0 : index
      %124 = vector.load %arg4[%c3, %c0_52, %c0_53] : memref<4x8x8xbf16, #tpu.memory_space<vmem>>, vector<1x8x8xbf16>
      %125 = vector.shape_cast %124 : vector<1x8x8xbf16> to vector<8x8xbf16>
      %126 = arith.extf %125 : vector<8x8xbf16> to vector<8x8xf32>
      %127 = arith.addf %123, %126 : vector<8x8xf32>
      %128 = arith.extf %21 : vector<1x8xbf16> to vector<1x8xf32>
      %129 = vector.broadcast %128 : vector<1x8xf32> to vector<8x8xf32>
      %130 = arith.addf %127, %129 : vector<8x8xf32>
      %cst_54 = arith.constant dense<0xFF800000> : vector<8xf32>
      %131 = vector.multi_reduction <maximumf>, %130, %cst_54 [1] : vector<8x8xf32> to vector<8xf32>
      %132 = vector.shape_cast %131 : vector<8xf32> to vector<8x1xf32>
      %133 = vector.broadcast %132 : vector<8x1xf32> to vector<8x8xf32>
      %134 = arith.subf %130, %133 : vector<8x8xf32>
      %135 = math.exp %134 : vector<8x8xf32>
      %cst_55 = arith.constant dense<0.000000e+00> : vector<8xf32>
      %136 = vector.multi_reduction <add>, %135, %cst_55 [1] : vector<8x8xf32> to vector<8xf32>
      %137 = vector.shape_cast %136 : vector<8xf32> to vector<8x1xf32>
      %138 = tpu.reciprocal %137 {approx = true} : vector<8x1xf32> -> vector<8x1xf32>
      %139 = vector.broadcast %138 : vector<8x1xf32> to vector<8x8xf32>
      %140 = arith.mulf %135, %139 : vector<8x8xf32>
      %141 = arith.truncf %140 : vector<8x8xf32> to vector<8x8xbf16>
      %cst_56 = arith.constant dense<0.000000e+00> : vector<8x8xf32>
      %142 = tpu.matmul %141, %121, %cst_56 {dimension_numbers = #tpu.dot_dimension_numbers<[1], [0], [0], [1], [0, 0, 1, 1], [], []>} : vector<8x8xbf16>, vector<8x8xbf16>, vector<8x8xf32> -> vector<8x8xf32>
      %143 = arith.truncf %142 : vector<8x8xf32> to vector<8x8xbf16>
      %c0_57 = arith.constant 0 : index
      %c24 = arith.constant 24 : index
      %144 = vector.load %arg16[%c0_57, %c24] : memref<8x32xbf16, #tpu.memory_space<vmem>>, vector<8x8xbf16>
      tpu.vector_store %arg16[%c0_57, %c24], %143 {strides = array<i32>} : memref<8x32xbf16, #tpu.memory_space<vmem>>, vector<8x8xbf16>,
      %c0_58 = arith.constant 0 : index
      %c0_59 = arith.constant 0 : index
      %145 = vector.load %arg16[%c0_58, %c0_59] : memref<8x32xbf16, #tpu.memory_space<vmem>>, vector<8x32xbf16>
      %c0_60 = arith.constant 0 : index
      %c0_61 = arith.constant 0 : index
      %146 = vector.load %arg7[%c0_60, %c0_61] : memref<32x32xbf16, #tpu.memory_space<vmem>>, vector<32x32xbf16>
      %cst_62 = arith.constant dense<0.000000e+00> : vector<8x32xf32>
      %147 = tpu.matmul %145, %146, %cst_62 {dimension_numbers = #tpu.dot_dimension_numbers<[1], [0], [0], [1], [0, 0, 1, 1], [], []>} : vector<8x32xbf16>, vector<32x32xbf16>, vector<8x32xf32> -> vector<8x32xf32>
      %148 = arith.addf %19, %147 : vector<8x32xf32>
      %c0_63 = arith.constant 0 : index
      %c0_64 = arith.constant 0 : index
      %149 = vector.load %arg13[%c0_63, %c0_64] : memref<8x32xf32, #tpu.memory_space<vmem>>, vector<8x32xf32>
      tpu.vector_store %arg13[%c0_63, %c0_64], %148 {strides = array<i32>} : memref<8x32xf32, #tpu.memory_space<vmem>>, vector<8x32xf32>,
      %150 = arith.mulf %148, %148 : vector<8x32xf32>
      %cst_65 = arith.constant dense<0.000000e+00> : vector<8xf32>
      %151 = vector.multi_reduction <add>, %150, %cst_65 [1] : vector<8x32xf32> to vector<8xf32>
      %152 = vector.shape_cast %151 : vector<8xf32> to vector<8x1xf32>
      %cst_66 = arith.constant 3.200000e+01 : f32
      %153 = vector.broadcast %cst_66 : f32 to vector<8x1xf32>
      %154 = arith.divf %152, %153 : vector<8x1xf32>
      %cst_67 = arith.constant 9.99999997E-7 : f32
      %155 = vector.broadcast %cst_67 : f32 to vector<8x1xf32>
      %156 = arith.addf %154, %155 : vector<8x1xf32>
      %157 = math.rsqrt %156 : vector<8x1xf32>
      %158 = vector.broadcast %157 : vector<8x1xf32> to vector<8x32xf32>
      %159 = arith.mulf %148, %158 : vector<8x32xf32>
      %c0_68 = arith.constant 0 : index
      %c0_69 = arith.constant 0 : index
      %160 = vector.load %arg8[%c0_68, %c0_69] : memref<1x32xf32, #tpu.memory_space<vmem>>, vector<1x32xf32>
      %161 = vector.shape_cast %160 : vector<1x32xf32> to vector<32xf32>
      %162 = vector.shape_cast %161 : vector<32xf32> to vector<1x32xf32>
      %163 = vector.broadcast %162 : vector<1x32xf32> to vector<8x32xf32>
      %164 = arith.mulf %159, %163 : vector<8x32xf32>
      %165 = arith.truncf %164 : vector<8x32xf32> to vector<8x32xbf16>
      %c0_70 = arith.constant 0 : index
      %c0_71 = arith.constant 0 : index
      %166 = vector.load %arg14[%c0_70, %c0_71] : memref<8x32xbf16, #tpu.memory_space<vmem>>, vector<8x32xbf16>
      tpu.vector_store %arg14[%c0_70, %c0_71], %165 {strides = array<i32>} : memref<8x32xbf16, #tpu.memory_space<vmem>>, vector<8x32xbf16>,
      %cst_72 = arith.constant 0.000000e+00 : f32
      %167 = vector.broadcast %cst_72 : f32 to vector<8x32xf32>
      %c0_73 = arith.constant 0 : index
      %c0_74 = arith.constant 0 : index
      %168 = vector.load %arg15[%c0_73, %c0_74] : memref<8x32xf32, #tpu.memory_space<vmem>>, vector<8x32xf32>
      tpu.vector_store %arg15[%c0_73, %c0_74], %167 {strides = array<i32>} : memref<8x32xf32, #tpu.memory_space<vmem>>, vector<8x32xf32>,
    } else {
    }
    %c0 = arith.constant 0 : index
    %c0_1 = arith.constant 0 : index
    %3 = vector.load %arg14[%c0, %c0_1] : memref<8x32xbf16, #tpu.memory_space<vmem>>, vector<8x32xbf16>
    %c0_2 = arith.constant 0 : index
    %c0_3 = arith.constant 0 : index
    %4 = vector.load %arg10[%c0_2, %c0_3] : memref<32x64xbf16, #tpu.memory_space<vmem>>, vector<32x64xbf16>
    %cst = arith.constant dense<0.000000e+00> : vector<8x64xf32>
    %5 = tpu.matmul %3, %4, %cst {dimension_numbers = #tpu.dot_dimension_numbers<[1], [0], [0], [1], [0, 0, 1, 1], [], []>} : vector<8x32xbf16>, vector<32x64xbf16>, vector<8x64xf32> -> vector<8x64xf32>
    %cst_4 = arith.constant 0.000000e+00 : f32
    %6 = vector.broadcast %cst_4 : f32 to vector<8x64xf32>
    %7 = arith.maximumf %5, %6 : vector<8x64xf32>
    %8 = arith.truncf %7 : vector<8x64xf32> to vector<8x64xbf16>
    %c0_5 = arith.constant 0 : index
    %c0_6 = arith.constant 0 : index
    %9 = vector.load %arg15[%c0_5, %c0_6] : memref<8x32xf32, #tpu.memory_space<vmem>>, vector<8x32xf32>
    %c0_7 = arith.constant 0 : index
    %c0_8 = arith.constant 0 : index
    %10 = vector.load %arg11[%c0_7, %c0_8] : memref<64x32xbf16, #tpu.memory_space<vmem>>, vector<64x32xbf16>
    %cst_9 = arith.constant dense<0.000000e+00> : vector<8x32xf32>
    %11 = tpu.matmul %8, %10, %cst_9 {dimension_numbers = #tpu.dot_dimension_numbers<[1], [0], [0], [1], [0, 0, 1, 1], [], []>} : vector<8x64xbf16>, vector<64x32xbf16>, vector<8x32xf32> -> vector<8x32xf32>
    %12 = arith.addf %9, %11 : vector<8x32xf32>
    %c0_10 = arith.constant 0 : index
    %c0_11 = arith.constant 0 : index
    %13 = vector.load %arg15[%c0_10, %c0_11] : memref<8x32xf32, #tpu.memory_space<vmem>>, vector<8x32xf32>
    tpu.vector_store %arg15[%c0_10, %c0_11], %12 {strides = array<i32>} : memref<8x32xf32, #tpu.memory_space<vmem>>, vector<8x32xf32>,
    %c0_i32_12 = arith.constant 0 : i32
    %14 = arith.cmpi eq, %arg1, %c0_i32_12 : i32
    %15 = arith.extui %14 : i1 to i32
    %c0_i32_13 = arith.constant 0 : i32
    %16 = arith.cmpi ne, %15, %c0_i32_13 : i32
    scf.if %16 {
      %c0_14 = arith.constant 0 : index
      %c0_15 = arith.constant 0 : index
      %17 = vector.load %arg13[%c0_14, %c0_15] : memref<8x32xf32, #tpu.memory_space<vmem>>, vector<8x32xf32>
      %c0_16 = arith.constant 0 : index
      %c0_17 = arith.constant 0 : index
      %18 = vector.load %arg15[%c0_16, %c0_17] : memref<8x32xf32, #tpu.memory_space<vmem>>, vector<8x32xf32>
      %19 = arith.addf %17, %18 : vector<8x32xf32>
      %20 = arith.truncf %19 : vector<8x32xf32> to vector<8x32xbf16>
      %c0_18 = arith.constant 0 : index
      %c0_19 = arith.constant 0 : index
      %c0_20 = arith.constant 0 : index
      %21 = vector.load %arg12[%c0_18, %c0_19, %c0_20] : memref<1x8x32xbf16, #tpu.memory_space<vmem>>, vector<1x8x32xbf16>
      %22 = vector.shape_cast %21 : vector<1x8x32xbf16> to vector<8x32xbf16>
      %23 = vector.shape_cast %20 : vector<8x32xbf16> to vector<1x8x32xbf16>
      tpu.vector_store %arg12[%c0_18, %c0_19, %c0_20], %23 {strides = array<i32>} : memref<1x8x32xbf16, #tpu.memory_space<vmem>>, vector<1x8x32xbf16>,
    } else {
    }
    return
  }
  func.func @transform_0(%arg0: i32, %arg1: i32) -> (i32, i32, i32) {
    %c0_i32 = arith.constant 0 : i32
    %c0_i32_0 = arith.constant 0 : i32
    %c0_i32_1 = arith.constant 0 : i32
    return %arg0, %c0_i32, %c0_i32_0 : i32, i32, i32
  }
  func.func @transform_1(%arg0: i32, %arg1: i32) -> (i32, i32, i32) {
    %c0_i32 = arith.constant 0 : i32
    %c0_i32_0 = arith.constant 0 : i32
    %c0_i32_1 = arith.constant 0 : i32
    return %arg0, %c0_i32, %c0_i32_0 : i32, i32, i32
  }
  func.func @transform_2(%arg0: i32, %arg1: i32) -> (i32, i32, i32) {
    %c0_i32 = arith.constant 0 : i32
    %c0_i32_0 = arith.constant 0 : i32
    %c0_i32_1 = arith.constant 0 : i32
    %c0_i32_2 = arith.constant 0 : i32
    return %c0_i32, %c0_i32_0, %c0_i32_1 : i32, i32, i32
  }
  func.func @transform_3(%arg0: i32, %arg1: i32) -> (i32, i32) {
    %c0_i32 = arith.constant 0 : i32
    %c0_i32_0 = arith.constant 0 : i32
    %c0_i32_1 = arith.constant 0 : i32
    return %c0_i32, %c0_i32_0 : i32, i32
  }
  func.func @transform_4(%arg0: i32, %arg1: i32) -> (i32, i32) {
    %c0_i32 = arith.constant 0 : i32
    %c0_i32_0 = arith.constant 0 : i32
    %c0_i32_1 = arith.constant 0 : i32
    return %c0_i32, %c0_i32_0 : i32, i32
  }
  func.func @transform_5(%arg0: i32, %arg1: i32) -> (i32, i32) {
    %c0_i32 = arith.constant 0 : i32
    %c0_i32_0 = arith.constant 0 : i32
    %c0_i32_1 = arith.constant 0 : i32
    return %c0_i32, %c0_i32_0 : i32, i32
  }
  func.func @transform_6(%arg0: i32, %arg1: i32) -> (i32, i32) {
    %c0_i32 = arith.constant 0 : i32
    %c0_i32_0 = arith.constant 0 : i32
    %c0_i32_1 = arith.constant 0 : i32
    return %c0_i32, %c0_i32_0 : i32, i32
  }
  func.func @transform_7(%arg0: i32, %arg1: i32) -> (i32, i32) {
    %c0_i32 = arith.constant 0 : i32
    %c0_i32_0 = arith.constant 0 : i32
    %c0_i32_1 = arith.constant 0 : i32
    return %c0_i32, %c0_i32_0 : i32, i32
  }
  func.func @transform_8(%arg0: i32, %arg1: i32) -> (i32, i32) {
    %c0_i32 = arith.constant 0 : i32
    %c0_i32_0 = arith.constant 0 : i32
    return %c0_i32, %arg1 : i32, i32
  }
  func.func @transform_9(%arg0: i32, %arg1: i32) -> (i32, i32) {
    %c0_i32 = arith.constant 0 : i32
    %c0_i32_0 = arith.constant 0 : i32
    return %arg1, %c0_i32 : i32, i32
  }
  func.func @transform_10(%arg0: i32, %arg1: i32) -> (i32, i32, i32) {
    %c0_i32 = arith.constant 0 : i32
    %c0_i32_0 = arith.constant 0 : i32
    %c0_i32_1 = arith.constant 0 : i32
    return %arg0, %c0_i32, %c0_i32_0 : i32, i32, i32
  }
}

</mosaic_0001>

<bundles_post_ra>
// kernel: tpu_custom_call.1
= control target key start
LH: loop header
LB: loop body
LE: loop exit
PB: predicated region body
PF: predicated region fallthrough
CT: control target
= control target key end

     0   :  { %s2377_s0 = inlined_call_operand.vmem [shape: bf16[4,8,32], index: 0, kind: input, shape index: {}]   ;;  %s2378_s1 = inlined_call_operand.vmem [shape: bf16[4,1,8], index: 1, kind: input, shape index: {}]   ;;  %s2379_s2 = inlined_call_operand.vmem [shape: bf16[4,8,8], index: 2, kind: input, shape index: {}]   ;;  %s2380_s3 = inlined_call_operand.hbm [shape: f32[1,32], index: 3, kind: input, shape index: {}]   ;;  %s2381_s4 = inlined_call_operand.vmem [shape: bf16[32,96], index: 4, kind: input, shape index: {}]   ;;  %s2382_s5 = inlined_call_operand.vmem [shape: bf16[32,32], index: 5, kind: input, shape index: {}]   ;;  %s2383_s6 = inlined_call_operand.hbm [shape: f32[1,32], index: 6, kind: input, shape index: {}]   ;;  %s2384_s7 = inlined_call_operand.hbm [shape: f32[1,32], index: 7, kind: input, shape index: {}]   ;;  %s2385_s8 = inlined_call_operand.hbm [shape: bf16[32,64], index: 8, kind: input, shape index: {}]   ;;  %s2386_s9 = inlined_call_operand.vmem [shape: bf16[64,32], index: 9, kind: input, shape index: {}]   ;;  %s2387_s10 = inlined_call_operand.hbm [shape: bf16[4,8,32], index: 10, kind: output, shape index: {}]  }
   0x1   :  { %2397 = sst [smem:[#allocation25_spill]] %s2383_s6 }
   0x2   :  { %15 = vsyncpa [#allocation7], 0 }
   0x3   :  { %16 = vsyncpa [#allocation10], 0 }
   0x4   :  { %17 = vsyncpa [#allocation13], 0 }
   0x5   :  { %18 = vsyncpa [#allocation8], 0 }
   0x6   :  { %20 = vsyncpa [#allocation8 + $0x1], 0  ;;  %s2015_s13 = smov 0   ;;  %s2017_s14 = smov 0  }
   0x7   :  { %s2019_s15 = smov 0   ;;  %s2021_s16 = smov 0  }
   0x8   :  { %s2023_s17 = smov 0   ;;  %s2025_s18 = smov 0  }
   0x9 LB: > { %2398 = sst [smem:[#allocation19_spill]] %s1915_s13  ;;  %s1422_s19 = sadd.s32 4294967295, %s1935_s18   ;;  %s1935_s18 = sphi %s2025_s18, %s26_s18   ;;  %s1931_s17 = sphi %s2023_s17, %s2420_s17   ;;  %s1927_s16 = sphi %s2021_s16, %s2419_s16   ;;  %s1923_s15 = sphi %s2019_s15, %s2418_s15   ;;  %s1919_s14 = sphi %s2017_s14, %s2422_s14   ;;  %s1915_s13 = sphi %s2015_s13, %s2421_s13  }
   0xa   : > { %2399 = sst [smem:[#allocation20_spill]] %s1923_s15  ;;  %s1423_s20 = sadd.s32 4294967294, %s1935_s18  }
   0xb   : > { %2400 = sst [smem:[#allocation21_spill]] %s1931_s17  ;;  %s38_s21 = sadd.s32 1, %s1931_s17 }
   0xc   : > { %s275_s22 = sadd.s32 1, %s1923_s15  ;;  %p40_p0 = scmp.ge.s32.totalorder %s38_s21, 4 }
   0xd   : > { %p285_p1 = scmp.ne.s32.totalorder %s1923_s15, %s1919_s14  ;;  %p286_p2 = scmp.eq.s32.totalorder %s1422_s19, 3 }
   0xe   : > { %p291_p3 = scmp.ne.s32.totalorder %s1919_s14, %s1915_s13  ;;  %s2424_s21 = smov (%p40_p0, %s38_s21), 0 }
   0xf   : > { %2401 = sst [smem:[#allocation22_spill]] %s2424_s21  ;;  %p2055_p4 = por %p286_p2, %p285_p1 }
  0x10   : > { %p292_p5 = scmp.eq.s32.totalorder %s1423_s20, 3  ;;  %s272_s24 = ssub.s32 %s1931_s17, %s2424_s21 }
  0x11   : > { %s2402_s23 = scalar_select %p2055_p4, 1, 0 }
  0x12   : > { %p1424_p6 = scmp.ge.s32.totalorder %s1935_s18, 1  ;;  %p273_p7 = scmp.eq.s32.totalorder %s272_s24, 0 }
  0x13   : > { %p2062_p8 = por %p292_p5, %p291_p3  ;;  %p299_p9 = scmp.lt.s32.totalorder %s1935_s18, 5 }
  0x14   : > { %s2068_s26 = scalar_select %p273_p7, %s1923_s15, %s275_s22  }
  0x15   : > { %s2403_s25 = scalar_select %p2062_p8, 1, 0 }
  0x16   : > { %2405 = sst [smem:[#allocation24_spill]] %s2068_s26  ;;  %p2070_p10 = pnand %p1424_p6, %p299_p9 }
  0x17   : > { %2404 = sst [smem:[#allocation23_spill]] %s2403_s25  ;;  %p2074_p11 = scmp.eq.s32.totalorder %s1422_s19, 0 }
  0x18   : > { %s2406_s27 = scalar_select %p2070_p10, 1, 0 }
  0x19   : > { %s2407_s28 = scalar_select %p2074_p11, 1, 0 }
  0x1a   : > { %p1607_p12 = pneg %p2070_p10  ;;  %s1937_s29 = smov [#allocation9]  }
  0x1b   : > { %s332_s30 = sshll.u32 %s1937_s29, 4  ;;  %s1938_s12 = smov [#allocation6]   ;;  %s333_s30 = int_to_ptr.vmem [resolvable:$true] %s332_s30 }
  0x1c   : > { %p2082_p13 = pnand %p2074_p11, %p1607_p12  ;;  %s315_s20 = sshll.u32 %s1938_s12, 4  ;;  %s2086_s20 = int_to_ptr.vmem [resolvable:$true] %s315_s20 }
  0x1d   : > { %s2409_s6 = sld [smem:[#allocation25_spill]] }
  0x1e   : > { %p2096_p1 = pneg %p2082_p13 }
  0x23   : > { %s1733_s24 = scalar_lea.hbm %s2409_s6, 16 }
  0x24   : > { %p1734_p0 = scmp.ne.s32.totalorder %s2409_s6, %s1733_s24  ;;  %p1740_p5 = scmp.lt.u32.totalorder %s1733_s24, %s2409_s6 }
  0x26   : > { %p1736_p2 = pnand %p2096_p1, %p1734_p0 }
  0x28   : > { %p1737_p3 = pneg %p1736_p2 }
  0x2a   : > { %p1742_p6 = pnand %p1740_p5, %p1737_p3 }
  0x2c   : > { %1745 = shalt.err (!%p1742_p6)
}
  0x2d   : > { %s1746_s19 = scalar_lea.vmem %s333_s30, 16  ;;  %s1753_s17 = scalar_lea.vmem %s333_s30, 32 }
  0x2e   : > { %p1747_p7 = scmp.ne.s32.totalorder %s333_s30, %s1746_s19  ;;  %p1754_p8 = scmp.lt.s32.totalorder %s333_s30, %s333_s30 }
  0x2f   : > { %p1755_p4 = scmp.lt.s32.totalorder %s1753_s17, %s1746_s19 }
  0x30   : > { %p1749_p9 = pnand %p1747_p7, %p2096_p1 }
  0x31   : > { %p1756_p11 = por %p1755_p4, %p1754_p8 }
  0x32   : > { %p1750_p12 = pneg %p1749_p9 }
  0x34   : > { %p1757_p10 = pnand %p1756_p11, %p1750_p12 }
  0x36   : > { %1760 = shalt.err (!%p1757_p10)
}
  0x37   : > { %1613 = dma.hbm_to_vmem [thread:$0]  (!%p2082_p13), %s2409_s6, 16, %s333_s30, [#allocation10]  }
  0x38   : > { %s1761_s12 = scalar_lea.hbm %s2380_s3, 16 }
  0x39   : > { %p1762_p0 = scmp.ne.s32.totalorder %s2380_s3, %s1761_s12  ;;  %p1768_p8 = scmp.lt.u32.totalorder %s1761_s12, %s2380_s3 }
  0x3b   : > { %p1764_p2 = pnand %p1762_p0, %p2096_p1 }
  0x3d   : > { %p1765_p4 = pneg %p1764_p2 }
  0x3f   : > { %p1770_p10 = pnand %p1768_p8, %p1765_p4 }
  0x41   : > { %1773 = shalt.err (!%p1770_p10)
}
  0x42   : > { %s1774_s30 = scalar_lea.vmem %s2086_s20, 16  ;;  %s1781_s15 = scalar_lea.vmem %s2086_s20, 32 }
  0x43   : > { %p1775_p11 = scmp.ne.s32.totalorder %s2086_s20, %s1774_s30  ;;  %p1782_p6 = scmp.lt.s32.totalorder %s2086_s20, %s2086_s20 }
  0x44   : > { %p1783_p7 = scmp.lt.s32.totalorder %s1781_s15, %s1774_s30 }
  0x45   : > { %p1777_p3 = pnand %p1775_p11, %p2096_p1 }
  0x46   : > { %p1784_p9 = por %p1783_p7, %p1782_p6 }
  0x47   : > { %p1778_p5 = pneg %p1777_p3 }
  0x49   : > { %p1785_p12 = pnand %p1784_p9, %p1778_p5 }
  0x4b   : > { %1788 = shalt.err (!%p1785_p12)
}
  0x4c   : > { %1610 = dma.hbm_to_vmem [thread:$0]  (!%p2082_p13), %s2380_s3, 16, %s2086_s20, [#allocation7]  }
  0x4d   : > { %s1939_s22 = smov [#allocation11]   ;;  %s1940_s24 = smov [#allocation12]  }
  0x4e   : > { %s343_s26 = sshll.u32 %s1939_s22, 4  ;;  %s355_s12 = sshll.u32 %s1940_s24, 4  ;;  %s344_s26 = int_to_ptr.vmem [resolvable:$true] %s343_s26  ;;  %s356_s12 = int_to_ptr.vmem [resolvable:$true] %s355_s12 }
  0x4f   : > { %s1789_s30 = scalar_lea.hbm %s2384_s7, 16 }
  0x50   : > { %p1790_p0 = scmp.ne.s32.totalorder %s2384_s7, %s1789_s30  ;;  %p1796_p8 = scmp.lt.u32.totalorder %s1789_s30, %s2384_s7 }
  0x52   : > { %p1792_p2 = pnand %p1790_p0, %p2096_p1 }
  0x54   : > { %p1793_p4 = pneg %p1792_p2 }
  0x56   : > { %p1798_p10 = pnand %p1796_p8, %p1793_p4 }
  0x58   : > { %1801 = shalt.err (!%p1798_p10)
}
  0x59   : > { %s1802_s20 = scalar_lea.vmem %s344_s26, 16  ;;  %s1809_s21 = scalar_lea.vmem %s344_s26, 32 }
  0x5a   : > { %p1803_p11 = scmp.ne.s32.totalorder %s344_s26, %s1802_s20  ;;  %p1810_p6 = scmp.lt.s32.totalorder %s344_s26, %s344_s26 }
  0x5b   : > { %p1811_p7 = scmp.lt.s32.totalorder %s1809_s21, %s1802_s20 }
  0x5c   : > { %p1805_p3 = pnand %p1803_p11, %p2096_p1 }
  0x5d   : > { %p1812_p9 = por %p1811_p7, %p1810_p6 }
  0x5e   : > { %p1806_p5 = pneg %p1805_p3 }
  0x60   : > { %p1813_p12 = pnand %p1812_p9, %p1806_p5 }
  0x62   : > { %1816 = shalt.err (!%p1813_p12)
}
  0x63   : > { %1616 = dma.hbm_to_vmem [thread:$0]  (!%p2082_p13), %s2384_s7, 16, %s344_s26, [#allocation10]  }
  0x64   : > { %s1817_s19 = scalar_lea.hbm %s2385_s8, 256 }
  0x65   : > { %p1818_p0 = scmp.ne.s32.totalorder %s2385_s8, %s1817_s19  ;;  %p1824_p8 = scmp.lt.u32.totalorder %s1817_s19, %s2385_s8 }
  0x67   : > { %p1820_p2 = pnand %p1818_p0, %p2096_p1 }
  0x69   : > { %p1821_p4 = pneg %p1820_p2 }
  0x6b   : > { %p1826_p10 = pnand %p1824_p8, %p1821_p4 }
  0x6d   : > { %1829 = shalt.err (!%p1826_p10)
}
  0x6e   : > { %s1830_s20 = scalar_lea.vmem %s356_s12, 256  ;;  %p1838_p6 = scmp.lt.s32.totalorder %s356_s12, %s356_s12 }
  0x6f   : > { %p1831_p11 = scmp.ne.s32.totalorder %s356_s12, %s1830_s20  ;;  %p1839_p7 = scmp.lt.s32.totalorder %s1830_s20, %s1830_s20 }
  0x71   : > { %p1833_p3 = pnand %p1831_p11, %p2096_p1  ;;  %p1840_p9 = por %p1839_p7, %p1838_p6 }
  0x73   : > { %p1834_p5 = pneg %p1833_p3 }
  0x75   : > { %p1841_p12 = pnand %p1840_p9, %p1834_p5 }
  0x77   : > { %1844 = shalt.err (!%p1841_p12)
}
  0x78   : > { %s1941_s26 = smov 64   ;;  %s1942_s21 = smov 4  }
  0x79   : > { %1619 = dma.hbm_to_vmem [thread:$0]  (!%p2082_p13), %s2385_s8, 256, %s356_s12, [#allocation13], %s1941_s26, %s1941_s26, %s1942_s21  }
  0x7a   : > { %p2411_p0 = scmp.ne.s32.totalorder %s2406_s27, 0 }
  0x7b   : > { %p2412_p2 = scmp.ne.s32.totalorder (!%p2411_p0), %s2407_s28, 0 }
  0x7c   : > { %393 = sbr.rel (%p2411_p0) target bundleno = 2423 (0x977), region = 60 }
  0x83   : > { %1898 = dma.done.wait (%p2412_p2), [#allocation7], 16  }
  0x84   : > { %1900 = vsyncadd (%p2412_p2), [#allocation7], 4294967280 }
  0x85   : > { %1902 = dma.done.wait (%p2412_p2), [#allocation10], 32  }
  0x86   : > { %1904 = vsyncadd (%p2412_p2), [#allocation10], 4294967264 }
  0x87   : > { %1906 = dma.done.wait (%p2412_p2), [#allocation13], 256  }
  0x88   : > { %1908 = vsyncadd (%p2412_p2), [#allocation13], 4294967040  ;;  %p450_p13 = scmp.lt.s32.totalorder %s1927_s16, 3  ;;  %vm472_vm0 = vcmask 261120   ;;  %v1703_v4 = vld [vmem:[%s2381_s4] sm:$0xff]   ;;  %v1943_v5 = vmov 0.0   ;;  %v603_v31 = vlaneseq }
  0x89   : > { %1505 = vmatprep.subr.bf16.mxu0 %v1943_v5  ;;  %1122 = vst.msk [vmem:[#allocation4] sm:$0xff] %vm472_vm0, %v1943_v5  ;;  %vm1944_vm1 = vmmov 0   ;;  %v1704_v6 = vld [vmem:[%s2381_s4 + $0x8] sm:$0xff]   ;;  %1513 = vmatprep.subr.bf16.mxu1 %v1943_v5  ;;  %v1438_v11 = vld [vmem:[#allocation6] ss:$0 sm:$0xff]  ;;  %s1945_s30 = smov 88  }
  0x8a   : > { %s2188_s27 = scalar_select %p450_p13, %s1927_s16, 3  ;;  %1509 = vmatprep.mubr.msk.bf16.mxu0 %vm1944_vm1, %v1943_v5  ;;  %1506 = vmatpush3.bf16.msra.mxu0 %v1703_v4  ;;  %vm555_vm2 = vcmask 64512   ;;  %v604_v32 = vshrl.u32 %v603_v31, 7  ;;  %v550_v34 = vld [vmem:[%s2379_s2] sm:$0xff]   ;;  %v1448_v51 = vld [vmem:[%s2379_s2 + $0x8] sm:$0xff]   ;;  %vm625_vm3 = vcmask 1043456  }
  0x8b   : > { %1507 = vmatprep.subr.bf16.mxu0 %v1943_v5  ;;  %1515 = vmatprep.mubr.msk.bf16.mxu1 %vm1944_vm1, %v1943_v5  ;;  %s1946_s15 = smov 96   ;;  %s1947_s25 = smov 120   ;;  %v551_v37 = vunpack.c.l.bf16 %v550_v34  ;;  %v674_v46 = vunpack.c.h.bf16 %v550_v34  ;;  %v797_v55 = vunpack.c.l.bf16 %v1448_v51  ;;  %v920_v63 = vunpack.c.h.bf16 %v1448_v51 }
  0x8c   : > { %s1437_s11 = sshll.u32 %s2188_s27, 2  ;;  %s1948_s20 = smov 80   ;;  %v605_v36 = vsub.s32 0, %v604_v32  ;;  %vm670_vm4 = vcmask 60416   ;;  %vm793_vm5 = vcmask 126016   ;;  %vm916_vm6 = vcmask 191616  }
  0x8d   : > { %s453_s13 = scalar_lea.vmem %s2377_s0, %s1437_s11  ;;  %s1949_s26 = smov 112   ;;  %vm1039_vm7 = vcmask 257216   ;;  %vm1120_vm8 = vcmask 257024   ;;  %vm1219_vm9 = vcmask 523264  }
  0x8e   : > { %v468_v0 = vld [vmem:[%s453_s13] sm:$0xf]  ;;  %1508 = vmatpush3.bf16.msra.mxu0 %v1704_v6  ;;  %s1950_s21 = smov 72   ;;  %s1951_s6 = smov 104  }
  0x8f   : > { %v2194_v1 = vunpack.c.l.bf16 %v468_v0  ;;  %1519 = vmatprep.subr.bf16.mxu0 %v1943_v5  ;;  %s456_s29 = scalar_lea.vmem %s2378_s1, %s2188_s27  ;;  %s1952_s24 = smov 56  }
  0x90   : > { %v470_v33 = vld [vmem:[%s456_s29] sm:$0x1]  ;;  %s1953_s19 = smov 64   ;;  %s1954_s17 = smov 40  }
  0x91   : > { %v471_v2 = vmul.f32 %v2194_v1, %v2194_v1  ;;  %v602_v35 = vunpack.c.l.bf16 %v470_v33  ;;  %s1958_s22 = smov 24   ;;  %p2413_p4 = scmp.ne.s32.totalorder %s2402_s23, 0 }
  0x93   : > { %v473_v3 = vsel %vm472_vm0, %v471_v2, 0.0  ;;  %v606_v38 = vrot.slane %v602_v35, %v605_v36 }
  0x94   : > { %474 = vadd.xlane.f32.xlu0 %v473_v3 }
 0x121   : > { %v475_v7 = vpop.xlane.xlu0 %474 }
 0x122   : > { %v477_v8 = vmul.f32 0.03125, %v475_v7 }
 0x124   : > { %v478_v9 = vadd.f32 1e-06, %v477_v8 }
 0x126   : > { %1713 = vrsqrt.f32 %v478_v9 }
 0x130   : > { %v1714_v10 = vpop.eup %1713 }
 0x131   : > { %v480_v12 = vmul.f32 %v1714_v10, %v2194_v1 }
 0x133   : > { %v488_v13 = vmul.f32 %v1438_v11, %v480_v12 }
 0x135   : > { %v489_v14 = vpack.c.bf16 %v488_v13, %v488_v13 }
 0x137   : > { %1510 = vmatmul.mubr.msk.bf16.vlgmr.msra.gmra.mrb[0].mxu0 %vm472_vm0, %v489_v14 }
 0x138   : > { %1521 = vmatprep.mubr.msk.bf16.mxu0 %vm1944_vm1, %v1943_v5 }
 0x20a   : > { %v543_v15 = vpop.f32.mrb[0].mxu0 }
 0x20b   : > { %v2219_v16 = vpack.c.bf16 %v543_v15, %v543_v15  ;;  %v1511_v17 = vpop.f32.mrb[1].mxu0 }
 0x20c   : > { %v546_v18 = vpop.f32.mrb[2].mxu0 }
 0x20d   : > { %677 = vrot.lane.b32.xlu1 %v2219_v16, %s1945_s30  ;;  %553 = vrot.lane.b32.xlu0 %v2219_v16, %s1946_s15  ;;  %v1512_v19 = vpop.f32.mrb[3].mxu0  ;;  %s1955_s30 = smov 48   ;;  %s1956_s15 = smov 8  }
 0x211   : > { %675 = vrot.lane.b32.xlu1 %v2219_v16, %s1947_s25 }
 0x215   : > { %800 = vrot.lane.b32.xlu1 %v2219_v16, %s1948_s20 }
 0x219   : > { %798 = vrot.lane.b32.xlu1 %v2219_v16, %s1949_s26 }
 0x21d   : > { %923 = vrot.lane.b32.xlu1 %v2219_v16, %s1950_s21 }
 0x221   : > { %921 = vrot.lane.b32.xlu1 %v2219_v16, %s1951_s6  ;;  %s1957_s6 = smov 16  }
 0x27f   : > { %v678_v20 = vpop.permute.xlu1 %677  ;;  %v554_v21 = vpop.permute.xlu0 %553 }
 0x280   : > { %v560_v22 = vsel %vm555_vm2, %v554_v21, 0  ;;  %v683_v24 = vsel %vm555_vm2, %v678_v20, 0 }
 0x281   : > { %1514 = vmatpush3.bf16.xpose.msra.mxu1 %v560_v22 }
 0x282   : > { %1525 = vmatprep.subr.bf16.mxu1 %v1943_v5 }
 0x283   : > { %v676_v23 = vpop.permute.xlu1 %675 }
 0x287   : > { %v801_v25 = vpop.permute.xlu1 %800 }
 0x288   : > { %1516 = vmatmul.mubr.msk.bf16.vlgmr.msra.gmra.mrb[0].mxu1 %vm555_vm2, %v2219_v16  ;;  %v806_v27 = vsel %vm555_vm2, %v801_v25, 0 }
 0x289   : > { %1526 = vmatpush3.bf16.xpose.msra.mxu1 %v683_v24  ;;  %1527 = vmatprep.mubr.msk.bf16.mxu1 %vm1944_vm1, %v1943_v5 }
 0x28a   : > { %1537 = vmatprep.subr.bf16.mxu1 %v1943_v5 }
 0x28b   : > { %v799_v26 = vpop.permute.xlu1 %798 }
 0x28f   : > { %v924_v28 = vpop.permute.xlu1 %923 }
 0x290   : > { %1528 = vmatmul.mubr.msk.bf16.vlgmr.msra.gmra.mrb[4].mxu1 %vm555_vm2, %v676_v23  ;;  %v929_v29 = vsel %vm555_vm2, %v924_v28, 0 }
 0x291   : > { %1538 = vmatpush3.bf16.xpose.msra.mxu1 %v806_v27  ;;  %1539 = vmatprep.mubr.msk.bf16.mxu1 %vm1944_vm1, %v1943_v5 }
 0x292   : > { %1549 = vmatprep.subr.bf16.mxu1 %v1943_v5 }
 0x293   : > { %v922_v30 = vpop.permute.xlu1 %921 }
 0x298   : > { %1540 = vmatmul.mubr.msk.bf16.vlgmr.msra.gmra.mrb[8].mxu1 %vm555_vm2, %v799_v26 }
 0x299   : > { %1550 = vmatpush3.bf16.xpose.msra.mxu1 %v929_v29  ;;  %1551 = vmatprep.mubr.msk.bf16.mxu1 %vm1944_vm1, %v1943_v5 }
 0x29a   : > { %1561 = vmatprep.subr.bf16.mxu1 %v1943_v5 }
 0x2a0   : > { %1552 = vmatmul.mubr.msk.bf16.vlgmr.msra.gmra.mrb[12].mxu1 %vm555_vm2, %v922_v30 }
 0x2a1   : > { %1565 = vmatprep.mubr.msk.bf16.mxu1 %vm1944_vm1, %v1943_v5 }
 0x35b   : > { %v596_v39 = vpop.f32.mrb[0].mxu1 }
 0x35c   : > { %v597_v40 = vadd.f32 %v596_v39, %v551_v37  ;;  %v1517_v41 = vpop.f32.mrb[1].mxu1 }
 0x35d   : > { %v599_v42 = vpop.f32.mrb[2].mxu1 }
 0x35e   : > { %v1518_v43 = vpop.f32.mrb[3].mxu1  ;;  %v607_v44 = vadd.f32 %v606_v38, %v597_v40 }
 0x360   : > { %v608_v45 = vsel %vm555_vm2, %v607_v44, -inf }
 0x361   : > { %609 = vmax.xlane.f32.xlu1 %v608_v45 }
 0x363   : > { %v719_v47 = vpop.f32.mrb[4].mxu1 }
 0x364   : > { %v720_v48 = vadd.f32 %v719_v47, %v674_v46  ;;  %v1529_v49 = vpop.f32.mrb[5].mxu1 }
 0x365   : > { %v722_v50 = vpop.f32.mrb[6].mxu1 }
 0x366   : > { %v1530_v52 = vpop.f32.mrb[7].mxu1  ;;  %v725_v53 = vadd.f32 %v720_v48, %v606_v38 }
 0x368   : > { %v726_v54 = vsel %vm555_vm2, %v725_v53, -inf }
 0x369   : > { %727 = vmax.xlane.f32.xlu0 %v726_v54 }
 0x36b   : > { %v842_v56 = vpop.f32.mrb[8].mxu1 }
 0x36c   : > { %v843_v57 = vadd.f32 %v842_v56, %v797_v55  ;;  %v1541_v58 = vpop.f32.mrb[9].mxu1 }
 0x36d   : > { %v845_v59 = vpop.f32.mrb[10].mxu1 }
 0x36e   : > { %v1542_v60 = vpop.f32.mrb[11].mxu1  ;;  %v848_v61 = vadd.f32 %v843_v57, %v606_v38 }
 0x370   : > { %v849_v62 = vsel %vm555_vm2, %v848_v61, -inf }
 0x371   : > { %850 = vmax.xlane.f32.xlu0 %v849_v62 }
 0x373   : > { %v965_v0 = vpop.f32.mrb[12].mxu1 }
 0x374   : > { %v966_v2 = vadd.f32 %v965_v0, %v920_v63  ;;  %v1553_v3 = vpop.f32.mrb[13].mxu1  ;;  %v1705_v63 = vld [vmem:[%s2382_s5] sm:$0xff]   ;;  %v1706_v0 = vld [vmem:[%s2382_s5 + $0x8] sm:$0xff]  }
 0x375   : > { %v968_v4 = vpop.f32.mrb[14].mxu1  ;;  %1562 = vmatpush3.bf16.msra.mxu1 %v1705_v63 }
 0x376   : > { %v1554_v6 = vpop.f32.mrb[15].mxu1  ;;  %v971_v7 = vadd.f32 %v966_v2, %v606_v38  ;;  %1563 = vmatprep.subr.bf16.mxu1 %v1943_v5 }
 0x378   : > { %v972_v8 = vsel %vm555_vm2, %v971_v7, -inf }
 0x379   : > { %973 = vmax.xlane.f32.xlu1 %v972_v8  ;;  %1564 = vmatpush3.bf16.msra.mxu1 %v1706_v0 }
 0x37a   : > { %1577 = vmatprep.subr.bf16.mxu1 %v1943_v5 }
 0x3ee   : > { %v610_v9 = vpop.xlane.xlu1 %609 }
 0x3ef   : > { %v611_v10 = vsub.f32 %v607_v44, %v610_v9 }
 0x3f1   : > { %v612_v11 = vmul.f32 1.442695, %v611_v10 }
 0x3f3   : > { %1715 = vpow2.f32 %v612_v11 }
 0x3f6   : > { %v728_v12 = vpop.xlane.xlu0 %727 }
 0x3f7   : > { %v729_v13 = vsub.f32 %v725_v53, %v728_v12 }
 0x3f9   : > { %v730_v14 = vmul.f32 1.442695, %v729_v13 }
 0x3fb   : > { %1717 = vpow2.f32 %v730_v14 }
 0x3fd   : > { %v1716_v15 = vpop.eup %1715 }
 0x3fe   : > { %v851_v17 = vpop.xlane.xlu0 %850  ;;  %v614_v18 = vsel %vm555_vm2, %v1716_v15, 0.0 }
 0x3ff   : > { %v852_v19 = vsub.f32 %v848_v61, %v851_v17  ;;  %615 = vadd.xlane.f32.xlu0 %v614_v18 }
 0x401   : > { %v853_v20 = vmul.f32 1.442695, %v852_v19 }
 0x403   : > { %1719 = vpow2.f32 %v853_v20 }
 0x405   : > { %v1718_v21 = vpop.eup %1717 }
 0x406   : > { %v732_v22 = vsel %vm555_vm2, %v1718_v21, 0.0  ;;  %v974_v25 = vpop.xlane.xlu1 %973 }
 0x407   : > { %733 = vadd.xlane.f32.xlu1 %v732_v22  ;;  %v975_v26 = vsub.f32 %v971_v7, %v974_v25  ;;  %v1707_v25 = vld [vmem:[#allocation12] sm:$0xff]  }
 0x409   : > { %v976_v27 = vmul.f32 1.442695, %v975_v26  ;;  %v1708_v26 = vld [vmem:[#allocation12 + $0x8] sm:$0xff]  }
 0x40b   : > { %1721 = vpow2.f32 %v976_v27  ;;  %v1709_v27 = vld [vmem:[%s2386_s9] sm:$0xff]  }
 0x40d   : > { %v1720_v23 = vpop.eup %1719 }
 0x40e   : > { %v855_v24 = vsel %vm555_vm2, %v1720_v23, 0.0 }
 0x40f   : > { %856 = vadd.xlane.f32.xlu0 %v855_v24 }
 0x415   : > { %v1722_v28 = vpop.eup %1721 }
 0x416   : > { %v978_v29 = vsel %vm555_vm2, %v1722_v28, 0.0 }
 0x418   : > { %738 = vrot.lane.b32.xlu1 %v2219_v16, %s1952_s24 }
 0x425   : > { %620 = vrot.lane.b32.xlu0 %v2219_v16, %s1953_s19 }
 0x429   : > { %984 = vrot.lane.b32.xlu0 %v2219_v16, %s1954_s17  ;;  %s447_s17 = sand.u32 1, %s1919_s14  }
 0x43c   : > { %979 = vadd.xlane.f32.xlu1 %v978_v29 }
 0x44d   : > { %861 = vrot.lane.b32.xlu1 %v2219_v16, %s1955_s30  ;;  %s1436_s30 = sshll.u32 %s447_s17, 2 }
 0x44e   : > { %s449_s25 = scalar_lea.vmem [#allocation14], %s1436_s30 }
 0x44f   : > { %s1288_s20 = sshll.u32 %s449_s25, 4  ;;  %s2331_s20 = int_to_ptr.vmem [resolvable:$true] %s1288_s20 }
 0x450   : > { %s1845_s11 = scalar_lea.vmem %s2331_s20, 64 }
 0x451   : > { %p1846_p1 = scmp.ne.s32.totalorder %s2331_s20, %s1845_s11 }
 0x453   : > { %p1847_p8 = pnand %p1846_p1, %p2413_p4 }
 0x455   : > { %p1848_p10 = pneg %p1847_p8 }
 0x48c   : > { %v616_v30 = vpop.xlane.xlu0 %615 }
 0x48d   : > { %1723 = vrcp.f32 %v616_v30 }
 0x494   : > { %v734_v31 = vpop.xlane.xlu1 %733 }
 0x495   : > { %1725 = vrcp.f32 %v734_v31 }
 0x497   : > { %v1724_v32 = vpop.eup %1723 }
 0x498   : > { %v618_v34 = vmul.f32 %v1724_v32, %v1716_v15  ;;  %v739_v37 = vpop.permute.xlu1 %738 }
 0x499   : > { %v744_v40 = vsel %vm625_vm3, %v739_v37, 0 }
 0x49a   : > { %v619_v38 = vpack.c.bf16 %v618_v34, %v618_v34 }
 0x49c   : > { %v857_v33 = vpop.xlane.xlu0 %856 }
 0x49d   : > { %1727 = vrcp.f32 %v857_v33  ;;  %v1459_v33 = vld [vmem:[#allocation9] ss:$0 sm:$0xff] }
 0x49f   : > { %v1726_v39 = vpop.eup %1725 }
 0x4a0   : > { %v621_v35 = vpop.permute.xlu0 %620  ;;  %v736_v16 = vmul.f32 %v1726_v39, %v1718_v21 }
 0x4a1   : > { %v627_v36 = vsel %vm625_vm3, %v621_v35, 0 }
 0x4a2   : > { %1520 = vmatpush3.bf16.msra.mxu0 %v627_v36  ;;  %v737_v41 = vpack.c.bf16 %v736_v16, %v736_v16 }
 0x4a3   : > { %1531 = vmatprep.subr.bf16.mxu0 %v1943_v5 }
 0x4a4   : > { %v985_v47 = vpop.permute.xlu0 %984 }
 0x4a5   : > { %1522 = vmatmul.mubr.msk.bf16.vlgmr.msra.gmra.mrb[4].mxu0 %vm555_vm2, %v619_v38  ;;  %v990_v49 = vsel %vm625_vm3, %v985_v47, 0 }
 0x4a6   : > { %1532 = vmatpush3.bf16.msra.mxu0 %v744_v40  ;;  %1533 = vmatprep.mubr.msk.bf16.mxu0 %vm1944_vm1, %v1943_v5 }
 0x4a7   : > { %1543 = vmatprep.subr.bf16.mxu0 %v1943_v5  ;;  %v1728_v42 = vpop.eup %1727 }
 0x4a8   : > { %v859_v44 = vmul.f32 %v1728_v42, %v1720_v23 }
 0x4aa   : > { %v860_v48 = vpack.c.bf16 %v859_v44, %v859_v44 }
 0x4ad   : > { %1534 = vmatmul.mubr.msk.bf16.vlgmr.msra.gmra.mrb[8].mxu0 %vm555_vm2, %v737_v41 }
 0x4ae   : > { %1545 = vmatprep.mubr.msk.bf16.mxu0 %vm1944_vm1, %v1943_v5 }
 0x4c9   : > { %v980_v43 = vpop.xlane.xlu1 %979 }
 0x4ca   : > { %1729 = vrcp.f32 %v980_v43  ;;  %v1186_v43 = vld [vmem:[#allocation4] sm:$0xff] }
 0x4cd   : > { %v862_v45 = vpop.permute.xlu1 %861 }
 0x4ce   : > { %v867_v46 = vsel %vm625_vm3, %v862_v45, 0 }
 0x4cf   : > { %1544 = vmatpush3.bf16.msra.mxu0 %v867_v46 }
 0x4d0   : > { %1555 = vmatprep.subr.bf16.mxu0 %v1943_v5 }
 0x4d2   : > { %1546 = vmatmul.mubr.msk.bf16.vlgmr.msra.gmra.mrb[12].mxu0 %vm555_vm2, %v860_v48 }
 0x4d3   : > { %1556 = vmatpush3.bf16.msra.mxu0 %v990_v49  ;;  %1557 = vmatprep.mubr.msk.bf16.mxu0 %vm1944_vm1, %v1943_v5 }
 0x4d4   : > { %v1730_v50 = vpop.eup %1729  ;;  %1569 = vmatprep.subr.bf16.mxu0 %v1943_v5 }
 0x4d5   : > { %v982_v51 = vmul.f32 %v1730_v50, %v1722_v28  ;;  %v1711_v28 = vld [vmem:[%s2386_s9 + $0x10] sm:$0xff]  }
 0x4d7   : > { %v983_v52 = vpack.c.bf16 %v982_v51, %v982_v51 }
 0x4da   : > { %1558 = vmatmul.mubr.msk.bf16.vlgmr.msra.gmra.mrb[16].mxu0 %vm555_vm2, %v983_v52 }
 0x4db   : > { %1573 = vmatprep.mubr.msk.bf16.mxu0 %vm1944_vm1, %v1943_v5  ;;  %1570 = vmatpush3.bf16.msra.mxu0 %v1707_v25 }
 0x4dc   : > { %1571 = vmatprep.subr.bf16.mxu0 %v1943_v5 }
 0x4df   : > { %1572 = vmatpush3.bf16.msra.mxu0 %v1708_v26 }
 0x578   : > { %v663_v53 = vpop.f32.mrb[4].mxu0 }
 0x579   : > { %v669_v54 = vpack.c.bf16 %v663_v53, %v663_v53  ;;  %v1523_v55 = vpop.f32.mrb[5].mxu0 }
 0x57a   : > { %v666_v56 = vpop.f32.mrb[6].mxu0 }
 0x57b   : > { %671 = vst.msk [vmem:[#allocation5] sm:$0xf] %vm670_vm4, %v669_v54  ;;  %v1524_v57 = vpop.f32.mrb[7].mxu0 }
 0x580   : > { %v780_v58 = vpop.f32.mrb[8].mxu0 }
 0x581   : > { %v1472_v59 = vpack.c.bf16 %v780_v58, %v780_v58  ;;  %v1535_v60 = vpop.f32.mrb[9].mxu0 }
 0x582   : > { %v783_v61 = vpop.f32.mrb[10].mxu0 }
 0x583   : > { %790 = vrot.lane.b32.xlu1 %v1472_v59, %s1956_s15  ;;  %v1536_v62 = vpop.f32.mrb[11].mxu0  ;;  %s1469_s15 = sshll.u32 %s1927_s16, 6  ;;  %s1959_s16 = smov [#allocation14]  }
 0x584   : > { %s1849_s29 = sshll.u32 %s1959_s16, 4  ;;  %s1850_s29 = int_to_ptr.vmem [resolvable:$false] %s1849_s29 }
 0x585   : > { %s1851_s12 = scalar_lea.vmem %s1850_s29, 128  ;;  %p1852_p11 = scmp.lt.s32.totalorder %s2331_s20, %s1850_s29 }
 0x586   : > { %p1853_p3 = scmp.lt.s32.totalorder %s1851_s12, %s1845_s11 }
 0x588   : > { %p1854_p5 = por %p1853_p3, %p1852_p11 }
 0x58a   : > { %p1855_p6 = pnand %p1854_p5, %p1848_p10 }
 0x5a5   : > { %v903_v2 = vpop.f32.mrb[12].mxu0 }
 0x5a6   : > { %v1473_v3 = vpack.c.bf16 %v903_v2, %v903_v2  ;;  %v1547_v4 = vpop.f32.mrb[13].mxu0 }
 0x5a7   : > { %v906_v6 = vpop.f32.mrb[14].mxu0 }
 0x5a8   : > { %913 = vrot.lane.b32.xlu0 %v1473_v3, %s1957_s6  ;;  %v1548_v7 = vpop.f32.mrb[15].mxu0  ;;  %s2329_s6 = scalar_lea.hbm %s2387_s10, %s1469_s15 }
 0x5ad   : > { %v1026_v8 = vpop.f32.mrb[16].mxu0 }
 0x5ae   : > { %v1474_v9 = vpack.c.bf16 %v1026_v8, %v1026_v8  ;;  %v1559_v10 = vpop.f32.mrb[17].mxu0 }
 0x5af   : > { %v1029_v11 = vpop.f32.mrb[18].mxu0 }
 0x5b0   : > { %1036 = vrot.lane.b32.xlu1 %v1474_v9, %s1958_s22  ;;  %v1560_v12 = vpop.f32.mrb[19].mxu0  ;;  %s1275_s22 = scalar_lea.sflag [#allocation8], %s447_s17 }
 0x5f5   : > { %v791_v13 = vpop.permute.xlu1 %790 }
 0x5f6   : > { %794 = vst.msk [vmem:[#allocation5] sm:$0xf] %vm793_vm5, %v791_v13 }
 0x61a   : > { %v914_v14 = vpop.permute.xlu0 %913 }
 0x61b   : > { %917 = vst.msk [vmem:[#allocation5] sm:$0xf] %vm916_vm6, %v914_v14 }
 0x622   : > { %v1037_v15 = vpop.permute.xlu1 %1036 }
 0x623   : > { %1040 = vst.msk [vmem:[#allocation5] sm:$0xf] %vm1039_vm7, %v1037_v15 }
 0x62a   : > { %v1041_v17 = vld [vmem:[#allocation5] sm:$0xf] }
 0x62b   : > { %1566 = vmatmul.mubr.msk.bf16.vlgmr.msra.gmra.mrb[16].mxu1 %vm472_vm0, %v1041_v17 }
 0x62c   : > { %1585 = vmatprep.mubr.msk.bf16.mxu1 %vm1944_vm1, %v1943_v5  ;;  %1578 = vmatpush3.bf16.msra.mxu1 %v1709_v27 }
 0x62d   : > { %1579 = vmatprep.subr.bf16.mxu1 %v1943_v5 }
 0x6fe   : > { %v1095_v18 = vpop.f32.mrb[16].mxu1 }
 0x6ff   : > { %v1101_v19 = vadd.f32 %v1095_v18, %v2194_v1  ;;  %v1567_v20 = vpop.f32.mrb[17].mxu1  ;;  %v1710_v1 = vld [vmem:[%s2386_s9 + $0x8] sm:$0xff]  }
 0x700   : > { %v1098_v21 = vpop.f32.mrb[18].mxu1  ;;  %1580 = vmatpush3.bf16.msra.mxu1 %v1710_v1 }
 0x701   : > { %1102 = vst.msk [vmem:[#allocation2] sm:$0xff] %vm472_vm0, %v1101_v19  ;;  %v1568_v22 = vpop.f32.mrb[19].mxu1  ;;  %v1103_v23 = vmul.f32 %v1101_v19, %v1101_v19  ;;  %1581 = vmatprep.subr.bf16.mxu1 %v1943_v5 }
 0x703   : > { %v1104_v24 = vsel %vm472_vm0, %v1103_v23, 0.0 }
 0x704   : > { %1105 = vadd.xlane.f32.xlu0 %v1104_v24  ;;  %1582 = vmatpush3.bf16.msra.mxu1 %v1711_v28 }
 0x705   : > { %1583 = vmatprep.subr.bf16.mxu1 %v1943_v5  ;;  %v1712_v5 = vld [vmem:[%s2386_s9 + $0x18] sm:$0xff]  }
 0x708   : > { %1584 = vmatpush3.bf16.msra.mxu1 %v1712_v5  ;;  %v1268_v49 = vld [vmem:[#allocation2] sm:$0xff] }
 0x791   : > { %v1106_v29 = vpop.xlane.xlu0 %1105 }
 0x792   : > { %v1107_v30 = vmul.f32 0.03125, %v1106_v29 }
 0x794   : > { %v1108_v31 = vadd.f32 1e-06, %v1107_v30 }
 0x796   : > { %1731 = vrsqrt.f32 %v1108_v31 }
 0x7a0   : > { %v1732_v32 = vpop.eup %1731 }
 0x7a1   : > { %v1110_v34 = vmul.f32 %v1732_v32, %v1101_v19 }
 0x7a3   : > { %v1118_v35 = vmul.f32 %v1459_v33, %v1110_v34 }
 0x7a5   : > { %v1119_v36 = vpack.c.bf16 %v1118_v35, %v1118_v35 }
 0x7a7   : > { %1121 = vst.msk [vmem:[#allocation3] sm:$0xf] %vm1120_vm8, %v1119_v36 }
 0x7ae   : > { %v1123_v37 = vld [vmem:[#allocation3] sm:$0xf] }
 0x7af   : > { %1574 = vmatmul.mubr.msk.bf16.vlgmr.msra.gmra.mrb[20].mxu0 %vm472_vm0, %v1123_v37 }
 0x882   : > { %v1178_v38 = vpop.f32.mrb[20].mxu0 }
 0x883   : > { %v1184_v39 = vmax.f32 %v1178_v38, 0.0  ;;  %v1575_v40 = vpop.f32.mrb[21].mxu0 }
 0x884   : > { %v1181_v16 = vpop.f32.mrb[22].mxu0 }
 0x885   : > { %v1185_v41 = vpack.c.bf16 %v1184_v39, %v1184_v39  ;;  %v1576_v42 = vpop.f32.mrb[23].mxu0 }
 0x887   : > { %1586 = vmatmul.mubr.msk.bf16.vlgmr.msra.gmra.mrb[20].mxu1 %vm1219_vm9, %v1185_v41 }
 0x95a   : > { %v1257_v44 = vpop.f32.mrb[20].mxu1 }
 0x95b   : > { %v1263_v45 = vadd.f32 %v1257_v44, %v1186_v43  ;;  %v1587_v46 = vpop.f32.mrb[21].mxu1 }
 0x95c   : > { %v1260_v47 = vpop.f32.mrb[22].mxu1 }
 0x95d   : > { %1264 = vst.msk [vmem:[#allocation4] sm:$0xff] %vm472_vm0, %v1263_v45  ;;  %v1588_v48 = vpop.f32.mrb[23].mxu1 }
 0x964   : > { %v1269_v50 = vld [vmem:[#allocation4] sm:$0xff] }
 0x965   : > { %v1270_v51 = vadd.f32 %v1269_v50, %v1268_v49 }
 0x967   : > { %v1271_v52 = vpack.c.bf16 %v1270_v51, %v1270_v51 }
 0x969   : > { %1273 = vst.msk [vmem:[%s449_s25] sm:$0xf] %vm1120_vm8, %v1271_v52 }
 0x96a   : > { %1858 = shalt.err (!%p1855_p6)
}
 0x96b   : > { %s1859_s13 = scalar_lea.hbm %s2329_s6, 64  ;;  %s1863_s24 = scalar_lea.hbm %s2387_s10, 256 }
 0x96c   : > { %p1860_p7 = scmp.ne.s32.totalorder %s2329_s6, %s1859_s13  ;;  %p1864_p0 = scmp.lt.u32.totalorder %s2329_s6, %s2387_s10 }
 0x96d   : > { %p1865_p2 = scmp.lt.u32.totalorder %s1863_s24, %s1859_s13  ;;  %p1867_p1 = scmp.lt.u32.totalorder %s1859_s13, %s2329_s6 }
 0x96e   : > { %p1861_p9 = pnand %p1860_p7, %p2413_p4 }
 0x96f   : > { %p1866_p13 = por %p1865_p2, %p1864_p0 }
 0x970   : > { %p1862_p12 = pneg %p1861_p9 }
 0x971   : > { %p1868_p8 = por %p1867_p1, %p1866_p13 }
 0x973   : > { %p1869_p10 = pnand %p1868_p8, %p1862_p12 }
 0x975   : > { %1872 = shalt.err (!%p1869_p10)
}
 0x976   : > { %1605 = dma.vmem_to_hbm [thread:$0]  (%p2413_p4), %s2331_s20, 64, %s2329_s6, %s1275_s22  }
 0x977 PF: > { %s2414_s30 = sld [smem:[#allocation19_spill]]  ;;  %s2415_s15 = sld [smem:[#allocation23_spill]] }
 0x978   : > { %p1632_p11 = scmp.ge.s32.totalorder %s1935_s18, 2 }
 0x97d   : > { %s1300_s25 = sand.u32 1, %s2414_s30   ;;  %p2416_p3 = scmp.ne.s32.totalorder %s2415_s15, 0 }
 0x97e   : > { %s1301_s26 = scalar_lea.sflag [#allocation8], %s1300_s25 }
 0x97f   : > { %p1621_p5 = pnand %p1632_p11, %p2416_p3 }
 0x981   : > { %1910 = dma.done.wait (!%p1621_p5), %s1301_s26, 64  }
 0x982   : > { %1912 = vsyncadd (!%p1621_p5), %s1301_s26, 4294967232  ;;  %s26_s18 = sadd.s32 1, %s1935_s18   ;;  %s2417_s21 = sld [smem:[#allocation20_spill]] }
 0x983   : > { %p23_p6 = scmp.ge.s32.totalorder %s26_s18, 6   ;;  %s2418_s15 = sld [smem:[#allocation24_spill]] }
 0x984   : > { %s2419_s16 = sld [smem:[#allocation21_spill]]  ;;  %s2420_s17 = sld [smem:[#allocation22_spill]] }
 0x985   : > { %s2421_s13 = smov %s1919_s14  ;;  %25 = sbr.rel (!%p23_p6) target bundleno = 9 (0x9), region = 130 }
 0x988   : > { %s2422_s14 = smov %s2417_s21 }
 0x98c   :  { %1306 = vsyncpa [#allocation7], 1 }
 0x98d   :  { %1308 = vsyncpa [#allocation7 + $0x1], 1 }
 0x98e   :  { %1309 = vsyncpa [#allocation10], 1 }
 0x98f   :  { %1310 = vsyncpa [#allocation13], 1 }
 0x990   :  { %1311 = vsyncpa [#allocation8], 1 }
 0x991   :  { %1313 = vsyncpa [#allocation8 + $0x1], 1 }

// kernel: tpu_custom_call.1
= control target key start
LH: loop header
LB: loop body
LE: loop exit
PB: predicated region body
PF: predicated region fallthrough
CT: control target
= control target key end

     0   :  { %s2377_s0 = inlined_call_operand.vmem [shape: bf16[4,8,32], index: 0, kind: input, shape index: {}]   ;;  %s2378_s1 = inlined_call_operand.vmem [shape: bf16[4,1,8], index: 1, kind: input, shape index: {}]   ;;  %s2379_s2 = inlined_call_operand.vmem [shape: bf16[4,8,8], index: 2, kind: input, shape index: {}]   ;;  %s2380_s3 = inlined_call_operand.hbm [shape: f32[1,32], index: 3, kind: input, shape index: {}]   ;;  %s2381_s4 = inlined_call_operand.vmem [shape: bf16[32,96], index: 4, kind: input, shape index: {}]   ;;  %s2382_s5 = inlined_call_operand.vmem [shape: bf16[32,32], index: 5, kind: input, shape index: {}]   ;;  %s2383_s6 = inlined_call_operand.hbm [shape: f32[1,32], index: 6, kind: input, shape index: {}]   ;;  %s2384_s7 = inlined_call_operand.hbm [shape: f32[1,32], index: 7, kind: input, shape index: {}]   ;;  %s2385_s8 = inlined_call_operand.hbm [shape: bf16[32,64], index: 8, kind: input, shape index: {}]   ;;  %s2386_s9 = inlined_call_operand.vmem [shape: bf16[64,32], index: 9, kind: input, shape index: {}]   ;;  %s2387_s10 = inlined_call_operand.hbm [shape: bf16[4,8,32], index: 10, kind: output, shape index: {}]  }
   0x1   :  { %2397 = sst [smem:[#allocation25_spill]] %s2383_s6 }
   0x2   :  { %15 = vsyncpa [#allocation7], 0 }
   0x3   :  { %16 = vsyncpa [#allocation10], 0 }
   0x4   :  { %17 = vsyncpa [#allocation13], 0 }
   0x5   :  { %18 = vsyncpa [#allocation8], 0 }
   0x6   :  { %20 = vsyncpa [#allocation8 + $0x1], 0  ;;  %s2015_s13 = smov 0   ;;  %s2017_s14 = smov 0  }
   0x7   :  { %s2019_s15 = smov 0   ;;  %s2021_s16 = smov 0  }
   0x8   :  { %s2023_s17 = smov 0   ;;  %s2025_s18 = smov 0  }
   0x9 LB: > { %2398 = sst [smem:[#allocation19_spill]] %s1915_s13  ;;  %s1422_s19 = sadd.s32 4294967295, %s1935_s18   ;;  %s1935_s18 = sphi %s2025_s18, %s26_s18   ;;  %s1931_s17 = sphi %s2023_s17, %s2420_s17   ;;  %s1927_s16 = sphi %s2021_s16, %s2419_s16   ;;  %s1923_s15 = sphi %s2019_s15, %s2418_s15   ;;  %s1919_s14 = sphi %s2017_s14, %s2422_s14   ;;  %s1915_s13 = sphi %s2015_s13, %s2421_s13  }
   0xa   : > { %2399 = sst [smem:[#allocation20_spill]] %s1923_s15  ;;  %s1423_s20 = sadd.s32 4294967294, %s1935_s18  }
   0xb   : > { %2400 = sst [smem:[#allocation21_spill]] %s1931_s17  ;;  %s38_s21 = sadd.s32 1, %s1931_s17 }
   0xc   : > { %s275_s22 = sadd.s32 1, %s1923_s15  ;;  %p40_p0 = scmp.ge.s32.totalorder %s38_s21, 4 }
   0xd   : > { %p285_p1 = scmp.ne.s32.totalorder %s1923_s15, %s1919_s14  ;;  %p286_p2 = scmp.eq.s32.totalorder %s1422_s19, 3 }
   0xe   : > { %p291_p3 = scmp.ne.s32.totalorder %s1919_s14, %s1915_s13  ;;  %s2424_s21 = smov (%p40_p0, %s38_s21), 0 }
   0xf   : > { %2401 = sst [smem:[#allocation22_spill]] %s2424_s21  ;;  %p2055_p4 = por %p286_p2, %p285_p1 }
  0x10   : > { %p292_p5 = scmp.eq.s32.totalorder %s1423_s20, 3  ;;  %s272_s24 = ssub.s32 %s1931_s17, %s2424_s21 }
  0x11   : > { %s2402_s23 = scalar_select %p2055_p4, 1, 0 }
  0x12   : > { %p1424_p6 = scmp.ge.s32.totalorder %s1935_s18, 1  ;;  %p273_p7 = scmp.eq.s32.totalorder %s272_s24, 0 }
  0x13   : > { %p2062_p8 = por %p292_p5, %p291_p3  ;;  %p299_p9 = scmp.lt.s32.totalorder %s1935_s18, 5 }
  0x14   : > { %s2068_s26 = scalar_select %p273_p7, %s1923_s15, %s275_s22  }
  0x15   : > { %s2403_s25 = scalar_select %p2062_p8, 1, 0 }
  0x16   : > { %2405 = sst [smem:[#allocation24_spill]] %s2068_s26  ;;  %p2070_p10 = pnand %p1424_p6, %p299_p9 }
  0x17   : > { %2404 = sst [smem:[#allocation23_spill]] %s2403_s25  ;;  %p2074_p11 = scmp.eq.s32.totalorder %s1422_s19, 0 }
  0x18   : > { %s2406_s27 = scalar_select %p2070_p10, 1, 0 }
  0x19   : > { %s2407_s28 = scalar_select %p2074_p11, 1, 0 }
  0x1a   : > { %p1607_p12 = pneg %p2070_p10  ;;  %s1937_s29 = smov [#allocation9]  }
  0x1b   : > { %s332_s30 = sshll.u32 %s1937_s29, 4  ;;  %s1938_s12 = smov [#allocation6]   ;;  %s333_s30 = int_to_ptr.vmem [resolvable:$true] %s332_s30 }
  0x1c   : > { %p2082_p13 = pnand %p2074_p11, %p1607_p12  ;;  %s315_s20 = sshll.u32 %s1938_s12, 4  ;;  %s2086_s20 = int_to_ptr.vmem [resolvable:$true] %s315_s20 }
  0x1d   : > { %s2409_s6 = sld [smem:[#allocation25_spill]] }
  0x1e   : > { %p2096_p1 = pneg %p2082_p13 }
  0x23   : > { %s1733_s24 = scalar_lea.hbm %s2409_s6, 16 }
  0x24   : > { %p1734_p0 = scmp.ne.s32.totalorder %s2409_s6, %s1733_s24  ;;  %p1740_p5 = scmp.lt.u32.totalorder %s1733_s24, %s2409_s6 }
  0x26   : > { %p1736_p2 = pnand %p2096_p1, %p1734_p0 }
  0x28   : > { %p1737_p3 = pneg %p1736_p2 }
  0x2a   : > { %p1742_p6 = pnand %p1740_p5, %p1737_p3 }
  0x2c   : > { %1745 = shalt.err (!%p1742_p6)
}
  0x2d   : > { %s1746_s19 = scalar_lea.vmem %s333_s30, 16  ;;  %s1753_s17 = scalar_lea.vmem %s333_s30, 32 }
  0x2e   : > { %p1747_p7 = scmp.ne.s32.totalorder %s333_s30, %s1746_s19  ;;  %p1754_p8 = scmp.lt.s32.totalorder %s333_s30, %s333_s30 }
  0x2f   : > { %p1755_p4 = scmp.lt.s32.totalorder %s1753_s17, %s1746_s19 }
  0x30   : > { %p1749_p9 = pnand %p1747_p7, %p2096_p1 }
  0x31   : > { %p1756_p11 = por %p1755_p4, %p1754_p8 }
  0x32   : > { %p1750_p12 = pneg %p1749_p9 }
  0x34   : > { %p1757_p10 = pnand %p1756_p11, %p1750_p12 }
  0x36   : > { %1760 = shalt.err (!%p1757_p10)
}
  0x37   : > { %1613 = dma.hbm_to_vmem [thread:$0]  (!%p2082_p13), %s2409_s6, 16, %s333_s30, [#allocation10]  }
  0x38   : > { %s1761_s12 = scalar_lea.hbm %s2380_s3, 16 }
  0x39   : > { %p1762_p0 = scmp.ne.s32.totalorder %s2380_s3, %s1761_s12  ;;  %p1768_p8 = scmp.lt.u32.totalorder %s1761_s12, %s2380_s3 }
  0x3b   : > { %p1764_p2 = pnand %p1762_p0, %p2096_p1 }
  0x3d   : > { %p1765_p4 = pneg %p1764_p2 }
  0x3f   : > { %p1770_p10 = pnand %p1768_p8, %p1765_p4 }
  0x41   : > { %1773 = shalt.err (!%p1770_p10)
}
  0x42   : > { %s1774_s30 = scalar_lea.vmem %s2086_s20, 16  ;;  %s1781_s15 = scalar_lea.vmem %s2086_s20, 32 }
  0x43   : > { %p1775_p11 = scmp.ne.s32.totalorder %s2086_s20, %s1774_s30  ;;  %p1782_p6 = scmp.lt.s32.totalorder %s2086_s20, %s2086_s20 }
  0x44   : > { %p1783_p7 = scmp.lt.s32.totalorder %s1781_s15, %s1774_s30 }
  0x45   : > { %p1777_p3 = pnand %p1775_p11, %p2096_p1 }
  0x46   : > { %p1784_p9 = por %p1783_p7, %p1782_p6 }
  0x47   : > { %p1778_p5 = pneg %p1777_p3 }
  0x49   : > { %p1785_p12 = pnand %p1784_p9, %p1778_p5 }
  0x4b   : > { %1788 = shalt.err (!%p1785_p12)
}
  0x4c   : > { %1610 = dma.hbm_to_vmem [thread:$0]  (!%p2082_p13), %s2380_s3, 16, %s2086_s20, [#allocation7]  }
  0x4d   : > { %s1939_s22 = smov [#allocation11]   ;;  %s1940_s24 = smov [#allocation12]  }
  0x4e   : > { %s343_s26 = sshll.u32 %s1939_s22, 4  ;;  %s355_s12 = sshll.u32 %s1940_s24, 4  ;;  %s344_s26 = int_to_ptr.vmem [resolvable:$true] %s343_s26  ;;  %s356_s12 = int_to_ptr.vmem [resolvable:$true] %s355_s12 }
  0x4f   : > { %s1789_s30 = scalar_lea.hbm %s2384_s7, 16 }
  0x50   : > { %p1790_p0 = scmp.ne.s32.totalorder %s2384_s7, %s1789_s30  ;;  %p1796_p8 = scmp.lt.u32.totalorder %s1789_s30, %s2384_s7 }
  0x52   : > { %p1792_p2 = pnand %p1790_p0, %p2096_p1 }
  0x54   : > { %p1793_p4 = pneg %p1792_p2 }
  0x56   : > { %p1798_p10 = pnand %p1796_p8, %p1793_p4 }
  0x58   : > { %1801 = shalt.err (!%p1798_p10)
}
  0x59   : > { %s1802_s20 = scalar_lea.vmem %s344_s26, 16  ;;  %s1809_s21 = scalar_lea.vmem %s344_s26, 32 }
  0x5a   : > { %p1803_p11 = scmp.ne.s32.totalorder %s344_s26, %s1802_s20  ;;  %p1810_p6 = scmp.lt.s32.totalorder %s344_s26, %s344_s26 }
  0x5b   : > { %p1811_p7 = scmp.lt.s32.totalorder %s1809_s21, %s1802_s20 }
  0x5c   : > { %p1805_p3 = pnand %p1803_p11, %p2096_p1 }
  0x5d   : > { %p1812_p9 = por %p1811_p7, %p1810_p6 }
  0x5e   : > { %p1806_p5 = pneg %p1805_p3 }
  0x60   : > { %p1813_p12 = pnand %p1812_p9, %p1806_p5 }
  0x62   : > { %1816 = shalt.err (!%p1813_p12)
}
  0x63   : > { %1616 = dma.hbm_to_vmem [thread:$0]  (!%p2082_p13), %s2384_s7, 16, %s344_s26, [#allocation10]  }
  0x64   : > { %s1817_s19 = scalar_lea.hbm %s2385_s8, 256 }
  0x65   : > { %p1818_p0 = scmp.ne.s32.totalorder %s2385_s8, %s1817_s19  ;;  %p1824_p8 = scmp.lt.u32.totalorder %s1817_s19, %s2385_s8 }
  0x67   : > { %p1820_p2 = pnand %p1818_p0, %p2096_p1 }
  0x69   : > { %p1821_p4 = pneg %p1820_p2 }
  0x6b   : > { %p1826_p10 = pnand %p1824_p8, %p1821_p4 }
  0x6d   : > { %1829 = shalt.err (!%p1826_p10)
}
  0x6e   : > { %s1830_s20 = scalar_lea.vmem %s356_s12, 256  ;;  %p1838_p6 = scmp.lt.s32.totalorder %s356_s12, %s356_s12 }
  0x6f   : > { %p1831_p11 = scmp.ne.s32.totalorder %s356_s12, %s1830_s20  ;;  %p1839_p7 = scmp.lt.s32.totalorder %s1830_s20, %s1830_s20 }
  0x71   : > { %p1833_p3 = pnand %p1831_p11, %p2096_p1  ;;  %p1840_p9 = por %p1839_p7, %p1838_p6 }
  0x73   : > { %p1834_p5 = pneg %p1833_p3 }
  0x75   : > { %p1841_p12 = pnand %p1840_p9, %p1834_p5 }
  0x77   : > { %1844 = shalt.err (!%p1841_p12)
}
  0x78   : > { %s1941_s26 = smov 64   ;;  %s1942_s21 = smov 4  }
  0x79   : > { %1619 = dma.hbm_to_vmem [thread:$0]  (!%p2082_p13), %s2385_s8, 256, %s356_s12, [#allocation13], %s1941_s26, %s1941_s26, %s1942_s21  }
  0x7a   : > { %p2411_p0 = scmp.ne.s32.totalorder %s2406_s27, 0 }
  0x7b   : > { %p2412_p2 = scmp.ne.s32.totalorder (!%p2411_p0), %s2407_s28, 0 }
  0x7c   : > { %393 = sbr.rel (%p2411_p0) target bundleno = 2423 (0x977), region = 60 }
  0x83   : > { %1898 = dma.done.wait (%p2412_p2), [#allocation7], 16  }
  0x84   : > { %1900 = vsyncadd (%p2412_p2), [#allocation7], 4294967280 }
  0x85   : > { %1902 = dma.done.wait (%p2412_p2), [#allocation10], 32  }
  0x86   : > { %1904 = vsyncadd (%p2412_p2), [#allocation10], 4294967264 }
  0x87   : > { %1906 = dma.done.wait (%p2412_p2), [#allocation13], 256  }
  0x88   : > { %1908 = vsyncadd (%p2412_p2), [#allocation13], 4294967040  ;;  %p450_p13 = scmp.lt.s32.totalorder %s1927_s16, 3  ;;  %vm472_vm0 = vcmask 261120   ;;  %v1703_v4 = vld [vmem:[%s2381_s4] sm:$0xff]   ;;  %v1943_v5 = vmov 0.0   ;;  %v603_v31 = vlaneseq }
  0x89   : > { %1505 = vmatprep.subr.bf16.mxu0 %v1943_v5  ;;  %1122 = vst.msk [vmem:[#allocation4] sm:$0xff] %vm472_vm0, %v1943_v5  ;;  %vm1944_vm1 = vmmov 0   ;;  %v1704_v6 = vld [vmem:[%s2381_s4 + $0x8] sm:$0xff]   ;;  %1513 = vmatprep.subr.bf16.mxu1 %v1943_v5  ;;  %v1438_v11 = vld [vmem:[#allocation6] ss:$0 sm:$0xff]  ;;  %s1945_s30 = smov 88  }
  0x8a   : > { %s2188_s27 = scalar_select %p450_p13, %s1927_s16, 3  ;;  %1509 = vmatprep.mubr.msk.bf16.mxu0 %vm1944_vm1, %v1943_v5  ;;  %1506 = vmatpush3.bf16.msra.mxu0 %v1703_v4  ;;  %vm555_vm2 = vcmask 64512   ;;  %v604_v32 = vshrl.u32 %v603_v31, 7  ;;  %v550_v34 = vld [vmem:[%s2379_s2] sm:$0xff]   ;;  %v1448_v51 = vld [vmem:[%s2379_s2 + $0x8] sm:$0xff]   ;;  %vm625_vm3 = vcmask 1043456  }
  0x8b   : > { %1507 = vmatprep.subr.bf16.mxu0 %v1943_v5  ;;  %1515 = vmatprep.mubr.msk.bf16.mxu1 %vm1944_vm1, %v1943_v5  ;;  %s1946_s15 = smov 96   ;;  %s1947_s25 = smov 120   ;;  %v551_v37 = vunpack.c.l.bf16 %v550_v34  ;;  %v674_v46 = vunpack.c.h.bf16 %v550_v34  ;;  %v797_v55 = vunpack.c.l.bf16 %v1448_v51  ;;  %v920_v63 = vunpack.c.h.bf16 %v1448_v51 }
  0x8c   : > { %s1437_s11 = sshll.u32 %s2188_s27, 2  ;;  %s1948_s20 = smov 80   ;;  %v605_v36 = vsub.s32 0, %v604_v32  ;;  %vm670_vm4 = vcmask 60416   ;;  %vm793_vm5 = vcmask 126016   ;;  %vm916_vm6 = vcmask 191616  }
  0x8d   : > { %s453_s13 = scalar_lea.vmem %s2377_s0, %s1437_s11  ;;  %s1949_s26 = smov 112   ;;  %vm1039_vm7 = vcmask 257216   ;;  %vm1120_vm8 = vcmask 257024   ;;  %vm1219_vm9 = vcmask 523264  }
  0x8e   : > { %v468_v0 = vld [vmem:[%s453_s13] sm:$0xf]  ;;  %1508 = vmatpush3.bf16.msra.mxu0 %v1704_v6  ;;  %s1950_s21 = smov 72   ;;  %s1951_s6 = smov 104  }
  0x8f   : > { %v2194_v1 = vunpack.c.l.bf16 %v468_v0  ;;  %1519 = vmatprep.subr.bf16.mxu0 %v1943_v5  ;;  %s456_s29 = scalar_lea.vmem %s2378_s1, %s2188_s27  ;;  %s1952_s24 = smov 56  }
  0x90   : > { %v470_v33 = vld [vmem:[%s456_s29] sm:$0x1]  ;;  %s1953_s19 = smov 64   ;;  %s1954_s17 = smov 40  }
  0x91   : > { %v471_v2 = vmul.f32 %v2194_v1, %v2194_v1  ;;  %v602_v35 = vunpack.c.l.bf16 %v470_v33  ;;  %s1958_s22 = smov 24   ;;  %p2413_p4 = scmp.ne.s32.totalorder %s2402_s23, 0 }
  0x93   : > { %v473_v3 = vsel %vm472_vm0, %v471_v2, 0.0  ;;  %v606_v38 = vrot.slane %v602_v35, %v605_v36 }
  0x94   : > { %474 = vadd.xlane.f32.xlu0 %v473_v3 }
 0x121   : > { %v475_v7 = vpop.xlane.xlu0 %474 }
 0x122   : > { %v477_v8 = vmul.f32 0.03125, %v475_v7 }
 0x124   : > { %v478_v9 = vadd.f32 1e-06, %v477_v8 }
 0x126   : > { %1713 = vrsqrt.f32 %v478_v9 }
 0x130   : > { %v1714_v10 = vpop.eup %1713 }
 0x131   : > { %v480_v12 = vmul.f32 %v1714_v10, %v2194_v1 }
 0x133   : > { %v488_v13 = vmul.f32 %v1438_v11, %v480_v12 }
 0x135   : > { %v489_v14 = vpack.c.bf16 %v488_v13, %v488_v13 }
 0x137   : > { %1510 = vmatmul.mubr.msk.bf16.vlgmr.msra.gmra.mrb[0].mxu0 %vm472_vm0, %v489_v14 }
 0x138   : > { %1521 = vmatprep.mubr.msk.bf16.mxu0 %vm1944_vm1, %v1943_v5 }
 0x20a   : > { %v543_v15 = vpop.f32.mrb[0].mxu0 }
 0x20b   : > { %v2219_v16 = vpack.c.bf16 %v543_v15, %v543_v15  ;;  %v1511_v17 = vpop.f32.mrb[1].mxu0 }
 0x20c   : > { %v546_v18 = vpop.f32.mrb[2].mxu0 }
 0x20d   : > { %677 = vrot.lane.b32.xlu1 %v2219_v16, %s1945_s30  ;;  %553 = vrot.lane.b32.xlu0 %v2219_v16, %s1946_s15  ;;  %v1512_v19 = vpop.f32.mrb[3].mxu0  ;;  %s1955_s30 = smov 48   ;;  %s1956_s15 = smov 8  }
 0x211   : > { %675 = vrot.lane.b32.xlu1 %v2219_v16, %s1947_s25 }
 0x215   : > { %800 = vrot.lane.b32.xlu1 %v2219_v16, %s1948_s20 }
 0x219   : > { %798 = vrot.lane.b32.xlu1 %v2219_v16, %s1949_s26 }
 0x21d   : > { %923 = vrot.lane.b32.xlu1 %v2219_v16, %s1950_s21 }
 0x221   : > { %921 = vrot.lane.b32.xlu1 %v2219_v16, %s1951_s6  ;;  %s1957_s6 = smov 16  }
 0x27f   : > { %v678_v20 = vpop.permute.xlu1 %677  ;;  %v554_v21 = vpop.permute.xlu0 %553 }
 0x280   : > { %v560_v22 = vsel %vm555_vm2, %v554_v21, 0  ;;  %v683_v24 = vsel %vm555_vm2, %v678_v20, 0 }
 0x281   : > { %1514 = vmatpush3.bf16.xpose.msra.mxu1 %v560_v22 }
 0x282   : > { %1525 = vmatprep.subr.bf16.mxu1 %v1943_v5 }
 0x283   : > { %v676_v23 = vpop.permute.xlu1 %675 }
 0x287   : > { %v801_v25 = vpop.permute.xlu1 %800 }
 0x288   : > { %1516 = vmatmul.mubr.msk.bf16.vlgmr.msra.gmra.mrb[0].mxu1 %vm555_vm2, %v2219_v16  ;;  %v806_v27 = vsel %vm555_vm2, %v801_v25, 0 }
 0x289   : > { %1526 = vmatpush3.bf16.xpose.msra.mxu1 %v683_v24  ;;  %1527 = vmatprep.mubr.msk.bf16.mxu1 %vm1944_vm1, %v1943_v5 }
 0x28a   : > { %1537 = vmatprep.subr.bf16.mxu1 %v1943_v5 }
 0x28b   : > { %v799_v26 = vpop.permute.xlu1 %798 }
 0x28f   : > { %v924_v28 = vpop.permute.xlu1 %923 }
 0x290   : > { %1528 = vmatmul.mubr.msk.bf16.vlgmr.msra.gmra.mrb[4].mxu1 %vm555_vm2, %v676_v23  ;;  %v929_v29 = vsel %vm555_vm2, %v924_v28, 0 }
 0x291   : > { %1538 = vmatpush3.bf16.xpose.msra.mxu1 %v806_v27  ;;  %1539 = vmatprep.mubr.msk.bf16.mxu1 %vm1944_vm1, %v1943_v5 }
 0x292   : > { %1549 = vmatprep.subr.bf16.mxu1 %v1943_v5 }
 0x293   : > { %v922_v30 = vpop.permute.xlu1 %921 }
 0x298   : > { %1540 = vmatmul.mubr.msk.bf16.vlgmr.msra.gmra.mrb[8].mxu1 %vm555_vm2, %v799_v26 }
 0x299   : > { %1550 = vmatpush3.bf16.xpose.msra.mxu1 %v929_v29  ;;  %1551 = vmatprep.mubr.msk.bf16.mxu1 %vm1944_vm1, %v1943_v5 }
 0x29a   : > { %1561 = vmatprep.subr.bf16.mxu1 %v1943_v5 }
 0x2a0   : > { %1552 = vmatmul.mubr.msk.bf16.vlgmr.msra.gmra.mrb[12].mxu1 %vm555_vm2, %v922_v30 }
 0x2a1   : > { %1565 = vmatprep.mubr.msk.bf16.mxu1 %vm1944_vm1, %v1943_v5 }
 0x35b   : > { %v596_v39 = vpop.f32.mrb[0].mxu1 }
 0x35c   : > { %v597_v40 = vadd.f32 %v596_v39, %v551_v37  ;;  %v1517_v41 = vpop.f32.mrb[1].mxu1 }
 0x35d   : > { %v599_v42 = vpop.f32.mrb[2].mxu1 }
 0x35e   : > { %v1518_v43 = vpop.f32.mrb[3].mxu1  ;;  %v607_v44 = vadd.f32 %v606_v38, %v597_v40 }
 0x360   : > { %v608_v45 = vsel %vm555_vm2, %v607_v44, -inf }
 0x361   : > { %609 = vmax.xlane.f32.xlu1 %v608_v45 }
 0x363   : > { %v719_v47 = vpop.f32.mrb[4].mxu1 }
 0x364   : > { %v720_v48 = vadd.f32 %v719_v47, %v674_v46  ;;  %v1529_v49 = vpop.f32.mrb[5].mxu1 }
 0x365   : > { %v722_v50 = vpop.f32.mrb[6].mxu1 }
 0x366   : > { %v1530_v52 = vpop.f32.mrb[7].mxu1  ;;  %v725_v53 = vadd.f32 %v720_v48, %v606_v38 }
 0x368   : > { %v726_v54 = vsel %vm555_vm2, %v725_v53, -inf }
 0x369   : > { %727 = vmax.xlane.f32.xlu0 %v726_v54 }
 0x36b   : > { %v842_v56 = vpop.f32.mrb[8].mxu1 }
 0x36c   : > { %v843_v57 = vadd.f32 %v842_v56, %v797_v55  ;;  %v1541_v58 = vpop.f32.mrb[9].mxu1 }
 0x36d   : > { %v845_v59 = vpop.f32.mrb[10].mxu1 }
 0x36e   : > { %v1542_v60 = vpop.f32.mrb[11].mxu1  ;;  %v848_v61 = vadd.f32 %v843_v57, %v606_v38 }
 0x370   : > { %v849_v62 = vsel %vm555_vm2, %v848_v61, -inf }
 0x371   : > { %850 = vmax.xlane.f32.xlu0 %v849_v62 }
 0x373   : > { %v965_v0 = vpop.f32.mrb[12].mxu1 }
 0x374   : > { %v966_v2 = vadd.f32 %v965_v0, %v920_v63  ;;  %v1553_v3 = vpop.f32.mrb[13].mxu1  ;;  %v1705_v63 = vld [vmem:[%s2382_s5] sm:$0xff]   ;;  %v1706_v0 = vld [vmem:[%s2382_s5 + $0x8] sm:$0xff]  }
 0x375   : > { %v968_v4 = vpop.f32.mrb[14].mxu1  ;;  %1562 = vmatpush3.bf16.msra.mxu1 %v1705_v63 }
 0x376   : > { %v1554_v6 = vpop.f32.mrb[15].mxu1  ;;  %v971_v7 = vadd.f32 %v966_v2, %v606_v38  ;;  %1563 = vmatprep.subr.bf16.mxu1 %v1943_v5 }
 0x378   : > { %v972_v8 = vsel %vm555_vm2, %v971_v7, -inf }
 0x379   : > { %973 = vmax.xlane.f32.xlu1 %v972_v8  ;;  %1564 = vmatpush3.bf16.msra.mxu1 %v1706_v0 }
 0x37a   : > { %1577 = vmatprep.subr.bf16.mxu1 %v1943_v5 }
 0x3ee   : > { %v610_v9 = vpop.xlane.xlu1 %609 }
 0x3ef   : > { %v611_v10 = vsub.f32 %v607_v44, %v610_v9 }
 0x3f1   : > { %v612_v11 = vmul.f32 1.442695, %v611_v10 }
 0x3f3   : > { %1715 = vpow2.f32 %v612_v11 }
 0x3f6   : > { %v728_v12 = vpop.xlane.xlu0 %727 }
 0x3f7   : > { %v729_v13 = vsub.f32 %v725_v53, %v728_v12 }
 0x3f9   : > { %v730_v14 = vmul.f32 1.442695, %v729_v13 }
 0x3fb   : > { %1717 = vpow2.f32 %v730_v14 }
 0x3fd   : > { %v1716_v15 = vpop.eup %1715 }
 0x3fe   : > { %v851_v17 = vpop.xlane.xlu0 %850  ;;  %v614_v18 = vsel %vm555_vm2, %v1716_v15, 0.0 }
 0x3ff   : > { %v852_v19 = vsub.f32 %v848_v61, %v851_v17  ;;  %615 = vadd.xlane.f32.xlu0 %v614_v18 }
 0x401   : > { %v853_v20 = vmul.f32 1.442695, %v852_v19 }
 0x403   : > { %1719 = vpow2.f32 %v853_v20 }
 0x405   : > { %v1718_v21 = vpop.eup %1717 }
 0x406   : > { %v732_v22 = vsel %vm555_vm2, %v1718_v21, 0.0  ;;  %v974_v25 = vpop.xlane.xlu1 %973 }
 0x407   : > { %733 = vadd.xlane.f32.xlu1 %v732_v22  ;;  %v975_v26 = vsub.f32 %v971_v7, %v974_v25  ;;  %v1707_v25 = vld [vmem:[#allocation12] sm:$0xff]  }
 0x409   : > { %v976_v27 = vmul.f32 1.442695, %v975_v26  ;;  %v1708_v26 = vld [vmem:[#allocation12 + $0x8] sm:$0xff]  }
 0x40b   : > { %1721 = vpow2.f32 %v976_v27  ;;  %v1709_v27 = vld [vmem:[%s2386_s9] sm:$0xff]  }
 0x40d   : > { %v1720_v23 = vpop.eup %1719 }
 0x40e   : > { %v855_v24 = vsel %vm555_vm2, %v1720_v23, 0.0 }
 0x40f   : > { %856 = vadd.xlane.f32.xlu0 %v855_v24 }
 0x415   : > { %v1722_v28 = vpop.eup %1721 }
 0x416   : > { %v978_v29 = vsel %vm555_vm2, %v1722_v28, 0.0 }
 0x418   : > { %738 = vrot.lane.b32.xlu1 %v2219_v16, %s1952_s24 }
 0x425   : > { %620 = vrot.lane.b32.xlu0 %v2219_v16, %s1953_s19 }
 0x429   : > { %984 = vrot.lane.b32.xlu0 %v2219_v16, %s1954_s17  ;;  %s447_s17 = sand.u32 1, %s1919_s14  }
 0x43c   : > { %979 = vadd.xlane.f32.xlu1 %v978_v29 }
 0x44d   : > { %861 = vrot.lane.b32.xlu1 %v2219_v16, %s1955_s30  ;;  %s1436_s30 = sshll.u32 %s447_s17, 2 }
 0x44e   : > { %s449_s25 = scalar_lea.vmem [#allocation14], %s1436_s30 }
 0x44f   : > { %s1288_s20 = sshll.u32 %s449_s25, 4  ;;  %s2331_s20 = int_to_ptr.vmem [resolvable:$true] %s1288_s20 }
 0x450   : > { %s1845_s11 = scalar_lea.vmem %s2331_s20, 64 }
 0x451   : > { %p1846_p1 = scmp.ne.s32.totalorder %s2331_s20, %s1845_s11 }
 0x453   : > { %p1847_p8 = pnand %p1846_p1, %p2413_p4 }
 0x455   : > { %p1848_p10 = pneg %p1847_p8 }
 0x48c   : > { %v616_v30 = vpop.xlane.xlu0 %615 }
 0x48d   : > { %1723 = vrcp.f32 %v616_v30 }
 0x494   : > { %v734_v31 = vpop.xlane.xlu1 %733 }
 0x495   : > { %1725 = vrcp.f32 %v734_v31 }
 0x497   : > { %v1724_v32 = vpop.eup %1723 }
 0x498   : > { %v618_v34 = vmul.f32 %v1724_v32, %v1716_v15  ;;  %v739_v37 = vpop.permute.xlu1 %738 }
 0x499   : > { %v744_v40 = vsel %vm625_vm3, %v739_v37, 0 }
 0x49a   : > { %v619_v38 = vpack.c.bf16 %v618_v34, %v618_v34 }
 0x49c   : > { %v857_v33 = vpop.xlane.xlu0 %856 }
 0x49d   : > { %1727 = vrcp.f32 %v857_v33  ;;  %v1459_v33 = vld [vmem:[#allocation9] ss:$0 sm:$0xff] }
 0x49f   : > { %v1726_v39 = vpop.eup %1725 }
 0x4a0   : > { %v621_v35 = vpop.permute.xlu0 %620  ;;  %v736_v16 = vmul.f32 %v1726_v39, %v1718_v21 }
 0x4a1   : > { %v627_v36 = vsel %vm625_vm3, %v621_v35, 0 }
 0x4a2   : > { %1520 = vmatpush3.bf16.msra.mxu0 %v627_v36  ;;  %v737_v41 = vpack.c.bf16 %v736_v16, %v736_v16 }
 0x4a3   : > { %1531 = vmatprep.subr.bf16.mxu0 %v1943_v5 }
 0x4a4   : > { %v985_v47 = vpop.permute.xlu0 %984 }
 0x4a5   : > { %1522 = vmatmul.mubr.msk.bf16.vlgmr.msra.gmra.mrb[4].mxu0 %vm555_vm2, %v619_v38  ;;  %v990_v49 = vsel %vm625_vm3, %v985_v47, 0 }
 0x4a6   : > { %1532 = vmatpush3.bf16.msra.mxu0 %v744_v40  ;;  %1533 = vmatprep.mubr.msk.bf16.mxu0 %vm1944_vm1, %v1943_v5 }
 0x4a7   : > { %1543 = vmatprep.subr.bf16.mxu0 %v1943_v5  ;;  %v1728_v42 = vpop.eup %1727 }
 0x4a8   : > { %v859_v44 = vmul.f32 %v1728_v42, %v1720_v23 }
 0x4aa   : > { %v860_v48 = vpack.c.bf16 %v859_v44, %v859_v44 }
 0x4ad   : > { %1534 = vmatmul.mubr.msk.bf16.vlgmr.msra.gmra.mrb[8].mxu0 %vm555_vm2, %v737_v41 }
 0x4ae   : > { %1545 = vmatprep.mubr.msk.bf16.mxu0 %vm1944_vm1, %v1943_v5 }
 0x4c9   : > { %v980_v43 = vpop.xlane.xlu1 %979 }
 0x4ca   : > { %1729 = vrcp.f32 %v980_v43  ;;  %v1186_v43 = vld [vmem:[#allocation4] sm:$0xff] }
 0x4cd   : > { %v862_v45 = vpop.permute.xlu1 %861 }
 0x4ce   : > { %v867_v46 = vsel %vm625_vm3, %v862_v45, 0 }
 0x4cf   : > { %1544 = vmatpush3.bf16.msra.mxu0 %v867_v46 }
 0x4d0   : > { %1555 = vmatprep.subr.bf16.mxu0 %v1943_v5 }
 0x4d2   : > { %1546 = vmatmul.mubr.msk.bf16.vlgmr.msra.gmra.mrb[12].mxu0 %vm555_vm2, %v860_v48 }
 0x4d3   : > { %1556 = vmatpush3.bf16.msra.mxu0 %v990_v49  ;;  %1557 = vmatprep.mubr.msk.bf16.mxu0 %vm1944_vm1, %v1943_v5 }
 0x4d4   : > { %v1730_v50 = vpop.eup %1729  ;;  %1569 = vmatprep.subr.bf16.mxu0 %v1943_v5 }
 0x4d5   : > { %v982_v51 = vmul.f32 %v1730_v50, %v1722_v28  ;;  %v1711_v28 = vld [vmem:[%s2386_s9 + $0x10] sm:$0xff]  }
 0x4d7   : > { %v983_v52 = vpack.c.bf16 %v982_v51, %v982_v51 }
 0x4da   : > { %1558 = vmatmul.mubr.msk.bf16.vlgmr.msra.gmra.mrb[16].mxu0 %vm555_vm2, %v983_v52 }
 0x4db   : > { %1573 = vmatprep.mubr.msk.bf16.mxu0 %vm1944_vm1, %v1943_v5  ;;  %1570 = vmatpush3.bf16.msra.mxu0 %v1707_v25 }
 0x4dc   : > { %1571 = vmatprep.subr.bf16.mxu0 %v1943_v5 }
 0x4df   : > { %1572 = vmatpush3.bf16.msra.mxu0 %v1708_v26 }
 0x578   : > { %v663_v53 = vpop.f32.mrb[4].mxu0 }
 0x579   : > { %v669_v54 = vpack.c.bf16 %v663_v53, %v663_v53  ;;  %v1523_v55 = vpop.f32.mrb[5].mxu0 }
 0x57a   : > { %v666_v56 = vpop.f32.mrb[6].mxu0 }
 0x57b   : > { %671 = vst.msk [vmem:[#allocation5] sm:$0xf] %vm670_vm4, %v669_v54  ;;  %v1524_v57 = vpop.f32.mrb[7].mxu0 }
 0x580   : > { %v780_v58 = vpop.f32.mrb[8].mxu0 }
 0x581   : > { %v1472_v59 = vpack.c.bf16 %v780_v58, %v780_v58  ;;  %v1535_v60 = vpop.f32.mrb[9].mxu0 }
 0x582   : > { %v783_v61 = vpop.f32.mrb[10].mxu0 }
 0x583   : > { %790 = vrot.lane.b32.xlu1 %v1472_v59, %s1956_s15  ;;  %v1536_v62 = vpop.f32.mrb[11].mxu0  ;;  %s1469_s15 = sshll.u32 %s1927_s16, 6  ;;  %s1959_s16 = smov [#allocation14]  }
 0x584   : > { %s1849_s29 = sshll.u32 %s1959_s16, 4  ;;  %s1850_s29 = int_to_ptr.vmem [resolvable:$false] %s1849_s29 }
 0x585   : > { %s1851_s12 = scalar_lea.vmem %s1850_s29, 128  ;;  %p1852_p11 = scmp.lt.s32.totalorder %s2331_s20, %s1850_s29 }
 0x586   : > { %p1853_p3 = scmp.lt.s32.totalorder %s1851_s12, %s1845_s11 }
 0x588   : > { %p1854_p5 = por %p1853_p3, %p1852_p11 }
 0x58a   : > { %p1855_p6 = pnand %p1854_p5, %p1848_p10 }
 0x5a5   : > { %v903_v2 = vpop.f32.mrb[12].mxu0 }
 0x5a6   : > { %v1473_v3 = vpack.c.bf16 %v903_v2, %v903_v2  ;;  %v1547_v4 = vpop.f32.mrb[13].mxu0 }
 0x5a7   : > { %v906_v6 = vpop.f32.mrb[14].mxu0 }
 0x5a8   : > { %913 = vrot.lane.b32.xlu0 %v1473_v3, %s1957_s6  ;;  %v1548_v7 = vpop.f32.mrb[15].mxu0  ;;  %s2329_s6 = scalar_lea.hbm %s2387_s10, %s1469_s15 }
 0x5ad   : > { %v1026_v8 = vpop.f32.mrb[16].mxu0 }
 0x5ae   : > { %v1474_v9 = vpack.c.bf16 %v1026_v8, %v1026_v8  ;;  %v1559_v10 = vpop.f32.mrb[17].mxu0 }
 0x5af   : > { %v1029_v11 = vpop.f32.mrb[18].mxu0 }
 0x5b0   : > { %1036 = vrot.lane.b32.xlu1 %v1474_v9, %s1958_s22  ;;  %v1560_v12 = vpop.f32.mrb[19].mxu0  ;;  %s1275_s22 = scalar_lea.sflag [#allocation8], %s447_s17 }
 0x5f5   : > { %v791_v13 = vpop.permute.xlu1 %790 }
 0x5f6   : > { %794 = vst.msk [vmem:[#allocation5] sm:$0xf] %vm793_vm5, %v791_v13 }
 0x61a   : > { %v914_v14 = vpop.permute.xlu0 %913 }
 0x61b   : > { %917 = vst.msk [vmem:[#allocation5] sm:$0xf] %vm916_vm6, %v914_v14 }
 0x622   : > { %v1037_v15 = vpop.permute.xlu1 %1036 }
 0x623   : > { %1040 = vst.msk [vmem:[#allocation5] sm:$0xf] %vm1039_vm7, %v1037_v15 }
 0x62a   : > { %v1041_v17 = vld [vmem:[#allocation5] sm:$0xf] }
 0x62b   : > { %1566 = vmatmul.mubr.msk.bf16.vlgmr.msra.gmra.mrb[16].mxu1 %vm472_vm0, %v1041_v17 }
 0x62c   : > { %1585 = vmatprep.mubr.msk.bf16.mxu1 %vm1944_vm1, %v1943_v5  ;;  %1578 = vmatpush3.bf16.msra.mxu1 %v1709_v27 }
 0x62d   : > { %1579 = vmatprep.subr.bf16.mxu1 %v1943_v5 }
 0x6fe   : > { %v1095_v18 = vpop.f32.mrb[16].mxu1 }
 0x6ff   : > { %v1101_v19 = vadd.f32 %v1095_v18, %v2194_v1  ;;  %v1567_v20 = vpop.f32.mrb[17].mxu1  ;;  %v1710_v1 = vld [vmem:[%s2386_s9 + $0x8] sm:$0xff]  }
 0x700   : > { %v1098_v21 = vpop.f32.mrb[18].mxu1  ;;  %1580 = vmatpush3.bf16.msra.mxu1 %v1710_v1 }
 0x701   : > { %1102 = vst.msk [vmem:[#allocation2] sm:$0xff] %vm472_vm0, %v1101_v19  ;;  %v1568_v22 = vpop.f32.mrb[19].mxu1  ;;  %v1103_v23 = vmul.f32 %v1101_v19, %v1101_v19  ;;  %1581 = vmatprep.subr.bf16.mxu1 %v1943_v5 }
 0x703   : > { %v1104_v24 = vsel %vm472_vm0, %v1103_v23, 0.0 }
 0x704   : > { %1105 = vadd.xlane.f32.xlu0 %v1104_v24  ;;  %1582 = vmatpush3.bf16.msra.mxu1 %v1711_v28 }
 0x705   : > { %1583 = vmatprep.subr.bf16.mxu1 %v1943_v5  ;;  %v1712_v5 = vld [vmem:[%s2386_s9 + $0x18] sm:$0xff]  }
 0x708   : > { %1584 = vmatpush3.bf16.msra.mxu1 %v1712_v5  ;;  %v1268_v49 = vld [vmem:[#allocation2] sm:$0xff] }
 0x791   : > { %v1106_v29 = vpop.xlane.xlu0 %1105 }
 0x792   : > { %v1107_v30 = vmul.f32 0.03125, %v1106_v29 }
 0x794   : > { %v1108_v31 = vadd.f32 1e-06, %v1107_v30 }
 0x796   : > { %1731 = vrsqrt.f32 %v1108_v31 }
 0x7a0   : > { %v1732_v32 = vpop.eup %1731 }
 0x7a1   : > { %v1110_v34 = vmul.f32 %v1732_v32, %v1101_v19 }
 0x7a3   : > { %v1118_v35 = vmul.f32 %v1459_v33, %v1110_v34 }
 0x7a5   : > { %v1119_v36 = vpack.c.bf16 %v1118_v35, %v1118_v35 }
 0x7a7   : > { %1121 = vst.msk [vmem:[#allocation3] sm:$0xf] %vm1120_vm8, %v1119_v36 }
 0x7ae   : > { %v1123_v37 = vld [vmem:[#allocation3] sm:$0xf] }
 0x7af   : > { %1574 = vmatmul.mubr.msk.bf16.vlgmr.msra.gmra.mrb[20].mxu0 %vm472_vm0, %v1123_v37 }
 0x882   : > { %v1178_v38 = vpop.f32.mrb[20].mxu0 }
 0x883   : > { %v1184_v39 = vmax.f32 %v1178_v38, 0.0  ;;  %v1575_v40 = vpop.f32.mrb[21].mxu0 }
 0x884   : > { %v1181_v16 = vpop.f32.mrb[22].mxu0 }
 0x885   : > { %v1185_v41 = vpack.c.bf16 %v1184_v39, %v1184_v39  ;;  %v1576_v42 = vpop.f32.mrb[23].mxu0 }
 0x887   : > { %1586 = vmatmul.mubr.msk.bf16.vlgmr.msra.gmra.mrb[20].mxu1 %vm1219_vm9, %v1185_v41 }
 0x95a   : > { %v1257_v44 = vpop.f32.mrb[20].mxu1 }
 0x95b   : > { %v1263_v45 = vadd.f32 %v1257_v44, %v1186_v43  ;;  %v1587_v46 = vpop.f32.mrb[21].mxu1 }
 0x95c   : > { %v1260_v47 = vpop.f32.mrb[22].mxu1 }
 0x95d   : > { %1264 = vst.msk [vmem:[#allocation4] sm:$0xff] %vm472_vm0, %v1263_v45  ;;  %v1588_v48 = vpop.f32.mrb[23].mxu1 }
 0x964   : > { %v1269_v50 = vld [vmem:[#allocation4] sm:$0xff] }
 0x965   : > { %v1270_v51 = vadd.f32 %v1269_v50, %v1268_v49 }
 0x967   : > { %v1271_v52 = vpack.c.bf16 %v1270_v51, %v1270_v51 }
 0x969   : > { %1273 = vst.msk [vmem:[%s449_s25] sm:$0xf] %vm1120_vm8, %v1271_v52 }
 0x96a   : > { %1858 = shalt.err (!%p1855_p6)
}
 0x96b   : > { %s1859_s13 = scalar_lea.hbm %s2329_s6, 64  ;;  %s1863_s24 = scalar_lea.hbm %s2387_s10, 256 }
 0x96c   : > { %p1860_p7 = scmp.ne.s32.totalorder %s2329_s6, %s1859_s13  ;;  %p1864_p0 = scmp.lt.u32.totalorder %s2329_s6, %s2387_s10 }
 0x96d   : > { %p1865_p2 = scmp.lt.u32.totalorder %s1863_s24, %s1859_s13  ;;  %p1867_p1 = scmp.lt.u32.totalorder %s1859_s13, %s2329_s6 }
 0x96e   : > { %p1861_p9 = pnand %p1860_p7, %p2413_p4 }
 0x96f   : > { %p1866_p13 = por %p1865_p2, %p1864_p0 }
 0x970   : > { %p1862_p12 = pneg %p1861_p9 }
 0x971   : > { %p1868_p8 = por %p1867_p1, %p1866_p13 }
 0x973   : > { %p1869_p10 = pnand %p1868_p8, %p1862_p12 }
 0x975   : > { %1872 = shalt.err (!%p1869_p10)
}
 0x976   : > { %1605 = dma.vmem_to_hbm [thread:$0]  (%p2413_p4), %s2331_s20, 64, %s2329_s6, %s1275_s22  }
 0x977 PF: > { %s2414_s30 = sld [smem:[#allocation19_spill]]  ;;  %s2415_s15 = sld [smem:[#allocation23_spill]] }
 0x978   : > { %p1632_p11 = scmp.ge.s32.totalorder %s1935_s18, 2 }
 0x97d   : > { %s1300_s25 = sand.u32 1, %s2414_s30   ;;  %p2416_p3 = scmp.ne.s32.totalorder %s2415_s15, 0 }
 0x97e   : > { %s1301_s26 = scalar_lea.sflag [#allocation8], %s1300_s25 }
 0x97f   : > { %p1621_p5 = pnand %p1632_p11, %p2416_p3 }
 0x981   : > { %1910 = dma.done.wait (!%p1621_p5), %s1301_s26, 64  }
 0x982   : > { %1912 = vsyncadd (!%p1621_p5), %s1301_s26, 4294967232  ;;  %s26_s18 = sadd.s32 1, %s1935_s18   ;;  %s2417_s21 = sld [smem:[#allocation20_spill]] }
 0x983   : > { %p23_p6 = scmp.ge.s32.totalorder %s26_s18, 6   ;;  %s2418_s15 = sld [smem:[#allocation24_spill]] }
 0x984   : > { %s2419_s16 = sld [smem:[#allocation21_spill]]  ;;  %s2420_s17 = sld [smem:[#allocation22_spill]] }
 0x985   : > { %s2421_s13 = smov %s1919_s14  ;;  %25 = sbr.rel (!%p23_p6) target bundleno = 9 (0x9), region = 130 }
 0x988   : > { %s2422_s14 = smov %s2417_s21 }
 0x98c   :  { %1306 = vsyncpa [#allocation7], 1 }
 0x98d   :  { %1308 = vsyncpa [#allocation7 + $0x1], 1 }
 0x98e   :  { %1309 = vsyncpa [#allocation10], 1 }
 0x98f   :  { %1310 = vsyncpa [#allocation13], 1 }
 0x990   :  { %1311 = vsyncpa [#allocation8], 1 }
 0x991   :  { %1313 = vsyncpa [#allocation8 + $0x1], 1 }

</bundles_post_ra>
